<compile_context>
chip_gen: v5e
topology: v5e:2x2
jax: 0.10.0
libtpu: 0.0.40
codegen_flags: <defaults>
</compile_context>

<pallas_src>
import jax
import jax.numpy as jnp
from jax import lax
from jax.experimental import pallas as pl
from jax.experimental.pallas import tpu as pltpu


def lstm_recurrence_kernel(xp_ref, whh_ref, h_out_ref, h_sc, c_sc):
    """One grid step = T_chunk timesteps; h/c carried in VMEM scratch (f32).

    xp_ref : (T_chunk, B_pad, 4*H_pad) f32  precomputed input projection+bias
             (gate-blocked: gate g occupies lanes [g*H_pad, (g+1)*H_pad))
    whh_ref: (H_pad, 4*H_pad) bf16          recurrent weights W_hh^T, resident
    h_out  : (B_pad, H_pad) f32             last hidden state (lane-dense)
    """
    n = pl.program_id(0)

    @pl.when(n == 0)
    def _():
        h_sc[...] = jnp.zeros_like(h_sc)
        c_sc[...] = jnp.zeros_like(c_sc)

    whh = whh_ref[...]                      # hoisted out of the time loop
    hp = h_sc.shape[1]
    t_chunk = xp_ref.shape[0]

    def step(t, carry):
        h, c = carry                        # f32 (B_pad, H_pad)
        # Only the recurrent matmul sits on the serial critical path.
        gates = xp_ref[t] + jnp.dot(h.astype(jnp.bfloat16), whh,
                                    preferred_element_type=jnp.float32)
        # Lane-aligned (128-wide) gate slices -> free full-vreg VPU/EUP ops.
        i_g = jax.nn.sigmoid(gates[:, 0 * hp:1 * hp])
        f_g = jax.nn.sigmoid(gates[:, 1 * hp:2 * hp])
        g_g = jnp.tanh(gates[:, 2 * hp:3 * hp])
        o_g = jax.nn.sigmoid(gates[:, 3 * hp:4 * hp])
        c_new = f_g * c + i_g * g_g
        h_new = o_g * jnp.tanh(c_new)
        return h_new, c_new

    h_new, c_new = lax.fori_loop(0, t_chunk, step, (h_sc[...], c_sc[...]),
                                 unroll=True)
    h_sc[...] = h_new
    c_sc[...] = c_new
    # Unconditional (8,128) vreg store — trivially cheap, avoids any
    # uninitialized-output subtlety across grid steps.
    h_out_ref[...] = h_new


def simple_lstm_forward(x, w_ih, w_hh, b_ih, b_hh, w_fc, b_fc, *, t_chunk=None):
    """x: (batch, seq, input_size) -> (batch, output_size).

    Weights use PyTorch conventions:
      w_ih: (4H, I), w_hh: (4H, H), b_ih/b_hh: (4H,), w_fc: (O, H), b_fc: (O,)
    """
    B, S, I = x.shape
    H = w_hh.shape[1]

    LANE, SUBLANE = 128, 8
    Hp = max(LANE, ((H + LANE - 1) // LANE) * LANE)       # pad each gate to 128 lanes
    Bp = max(SUBLANE, ((B + SUBLANE - 1) // SUBLANE) * SUBLANE)

    if t_chunk is None:
        t_chunk = S                                        # whole seq in one grid step
    assert S % t_chunk == 0, "t_chunk must divide seq length"
    num_chunks = S // t_chunk

    xf = x.astype(jnp.float32)

    # --- Hoisted input projection: one big (B*S, I) x (I, 4H) matmul + bias ---
    proj = xf.reshape(B * S, I) @ w_ih.astype(jnp.float32).T \
        + (b_ih + b_hh).astype(jnp.float32)                # (B*S, 4H)
    proj = proj.reshape(B, S, 4, H).transpose(1, 0, 2, 3)  # (S, B, 4, H) time-major
    proj = jnp.pad(proj, ((0, 0), (0, Bp - B), (0, 0), (0, Hp - H)))
    proj = proj.reshape(S, Bp, 4 * Hp)                     # gate-blocked, lane-aligned
    # (zero padding keeps padded h/c exactly 0 through the recurrence)

    # --- Gate-blocked, zero-padded recurrent weights in bf16 for the MXU ---
    whh_t = w_hh.astype(jnp.float32).T.reshape(H, 4, H)    # (H, 4, H)
    whh_t = jnp.pad(whh_t, ((0, Hp - H), (0, 0), (0, Hp - H)))
    whh_t = whh_t.reshape(Hp, 4 * Hp).astype(jnp.bfloat16)

    # TODO(synk): for large batches, add a leading "parallel" batch-tile grid
    # axis to use the second TensorCore on v7x; pointless at B_pad=8.
    grid_spec = pltpu.PrefetchScalarGridSpec(
        num_scalar_prefetch=0,
        grid=(num_chunks,),
        in_specs=[
            pl.BlockSpec((t_chunk, Bp, 4 * Hp), lambda n: (n, 0, 0)),  # chunk of precomputed gates
            pl.BlockSpec((Hp, 4 * Hp), lambda n: (0, 0)),              # W_hh^T resident
        ],
        out_specs=pl.BlockSpec((Bp, Hp), lambda n: (0, 0)),            # resident, lane-dense
        scratch_shapes=[
            pltpu.VMEM((Bp, Hp), jnp.float32),                         # h state (f32)
            pltpu.VMEM((Bp, Hp), jnp.float32),                         # c state (f32)
        ],
    )

    h_last = pl.pallas_call(
        lstm_recurrence_kernel,
        out_shape=jax.ShapeDtypeStruct((Bp, Hp), jnp.float32),
        grid_spec=grid_spec,
        compiler_params=pltpu.CompilerParams(
            dimension_semantics=("arbitrary",),            # serial time recurrence
            vmem_limit_bytes=32 * 1024 * 1024,
        ),
    )(proj, whh_t)

    # --- Final Linear outside the kernel (used once; O << 128 lanes) ---
    h_last = h_last[:B, :H]
    return h_last @ w_fc.astype(jnp.float32).T + b_fc.astype(jnp.float32)


def simple_lstm_reference(x, w_ih, w_hh, b_ih, b_hh, w_fc, b_fc):
    """Pure-JAX f32 reference mirroring torch.nn.LSTM + Linear semantics."""
    B, S, I = x.shape
    H = w_hh.shape[1]
    h = jnp.zeros((B, H), jnp.float32)
    c = jnp.zeros((B, H), jnp.float32)
    for t in range(S):
        g = x[:, t, :] @ w_ih.T + b_ih + h @ w_hh.T + b_hh
        i_g = jax.nn.sigmoid(g[:, 0 * H:1 * H])
        f_g = jax.nn.sigmoid(g[:, 1 * H:2 * H])
        g_g = jnp.tanh(g[:, 2 * H:3 * H])
        o_g = jax.nn.sigmoid(g[:, 3 * H:4 * H])
        c = f_g * c + i_g * g_g
        h = o_g * jnp.tanh(c)
    return h @ w_fc.T + b_fc


if __name__ == "__main__":
    batch, seq, input_size, hidden_size, output_size = 2, 8, 16, 32, 4

    key = jax.random.PRNGKey(0)
    ks = jax.random.split(key, 7)
    scale = 1.0 / jnp.sqrt(hidden_size)
    x = jax.random.normal(ks[0], (batch, seq, input_size), jnp.float32)
    w_ih = jax.random.uniform(ks[1], (4 * hidden_size, input_size), jnp.float32,
                              -scale, scale)
    w_hh = jax.random.uniform(ks[2], (4 * hidden_size, hidden_size), jnp.float32,
                              -scale, scale)
    b_ih = jax.random.uniform(ks[3], (4 * hidden_size,), jnp.float32, -scale, scale)
    b_hh = jax.random.uniform(ks[4], (4 * hidden_size,), jnp.float32, -scale, scale)
    w_fc = jax.random.uniform(ks[5], (output_size, hidden_size), jnp.float32,
                              -scale, scale)
    b_fc = jax.random.uniform(ks[6], (output_size,), jnp.float32, -scale, scale)

    out = simple_lstm_forward(x, w_ih, w_hh, b_ih, b_hh, w_fc, b_fc)
    out = jax.block_until_ready(out)

    ref = simple_lstm_reference(x, w_ih, w_hh, b_ih, b_hh, w_fc, b_fc)
    assert out.shape == (batch, output_size)
    # bf16 recurrent matmul -> loosened tolerance vs f32 reference.
    assert jnp.allclose(out, ref, atol=2e-2, rtol=2e-2), (
        f"max abs err {jnp.max(jnp.abs(out - ref))}")

    print("KERNEL_OK")
</pallas_src>

<mosaic_0001>
module attributes {stable_mosaic.version = 11 : i64} {
  func.func @lstm_recurrence_kernel(%arg0: i32, %arg1: memref<8x8x512xf32, #tpu.memory_space<vmem>>, %arg2: memref<128x512xbf16, #tpu.memory_space<vmem>>, %arg3: memref<8x128xf32, #tpu.memory_space<vmem>>, %arg4: memref<8x128xf32, #tpu.memory_space<vmem>>, %arg5: memref<8x128xf32, #tpu.memory_space<vmem>>) attributes {dimension_semantics = [#tpu.dimension_semantics<arbitrary>], iteration_bounds = array<i64: 1>, scalar_prefetch = 0 : i64, scratch_operands = 2 : i64, tpu.core_type = #tpu.core_type<tc>, window_params = [{transform_indices = @transform_0, window_bounds = array<i64: 8, 8, 512>}, {pipeline_mode = #tpu.pipeline_mode<synchronous>, transform_indices = @transform_1, window_bounds = array<i64: 128, 512>}, {pipeline_mode = #tpu.pipeline_mode<synchronous>, transform_indices = @transform_2, window_bounds = array<i64: 8, 128>}]} {
    %c0_i32 = arith.constant 0 : i32
    %0 = arith.cmpi eq, %arg0, %c0_i32 : i32
    %1 = arith.extui %0 : i1 to i32
    %c0_i32_0 = arith.constant 0 : i32
    %2 = arith.cmpi ne, %1, %c0_i32_0 : i32
    scf.if %2 {
      %cst_60 = arith.constant 0.000000e+00 : f32
      %257 = vector.broadcast %cst_60 : f32 to vector<8x128xf32>
      %c0_61 = arith.constant 0 : index
      %c0_62 = arith.constant 0 : index
      %258 = vector.load %arg4[%c0_61, %c0_62] : memref<8x128xf32, #tpu.memory_space<vmem>>, vector<8x128xf32>
      tpu.vector_store %arg4[%c0_61, %c0_62], %257 {strides = array<i32>} : memref<8x128xf32, #tpu.memory_space<vmem>>, vector<8x128xf32>,
      %cst_63 = arith.constant 0.000000e+00 : f32
      %259 = vector.broadcast %cst_63 : f32 to vector<8x128xf32>
      %c0_64 = arith.constant 0 : index
      %c0_65 = arith.constant 0 : index
      %260 = vector.load %arg5[%c0_64, %c0_65] : memref<8x128xf32, #tpu.memory_space<vmem>>, vector<8x128xf32>
      tpu.vector_store %arg5[%c0_64, %c0_65], %259 {strides = array<i32>} : memref<8x128xf32, #tpu.memory_space<vmem>>, vector<8x128xf32>,
    } else {
    }
    %c0 = arith.constant 0 : index
    %c0_1 = arith.constant 0 : index
    %3 = vector.load %arg2[%c0, %c0_1] : memref<128x512xbf16, #tpu.memory_space<vmem>>, vector<128x512xbf16>
    %c0_2 = arith.constant 0 : index
    %c0_3 = arith.constant 0 : index
    %4 = vector.load %arg4[%c0_2, %c0_3] : memref<8x128xf32, #tpu.memory_space<vmem>>, vector<8x128xf32>
    %c0_4 = arith.constant 0 : index
    %c0_5 = arith.constant 0 : index
    %5 = vector.load %arg5[%c0_4, %c0_5] : memref<8x128xf32, #tpu.memory_space<vmem>>, vector<8x128xf32>
    %c0_i32_6 = arith.constant 0 : i32
    %6 = arith.index_cast %c0_i32_6 : i32 to index
    %c0_7 = arith.constant 0 : index
    %c0_8 = arith.constant 0 : index
    %7 = vector.load %arg1[%6, %c0_7, %c0_8] : memref<8x8x512xf32, #tpu.memory_space<vmem>>, vector<1x8x512xf32>
    %8 = vector.shape_cast %7 : vector<1x8x512xf32> to vector<8x512xf32>
    %9 = arith.truncf %4 : vector<8x128xf32> to vector<8x128xbf16>
    %cst = arith.constant dense<0.000000e+00> : vector<8x512xf32>
    %10 = tpu.matmul %9, %3, %cst {dimension_numbers = #tpu.dot_dimension_numbers<[1], [0], [0], [1], [0, 0, 1, 1], [], []>} : vector<8x128xbf16>, vector<128x512xbf16>, vector<8x512xf32> -> vector<8x512xf32>
    %11 = arith.addf %8, %10 : vector<8x512xf32>
    %12 = vector.extract_strided_slice %11 {offsets = [0, 0], sizes = [8, 128], strides = [1, 1]} : vector<8x512xf32> to vector<8x128xf32>
    %13 = arith.negf %12 : vector<8x128xf32>
    %14 = math.exp %13 : vector<8x128xf32>
    %cst_9 = arith.constant 1.000000e+00 : f32
    %15 = vector.broadcast %cst_9 : f32 to vector<8x128xf32>
    %16 = arith.addf %15, %14 : vector<8x128xf32>
    %17 = arith.divf %15, %16 : vector<8x128xf32>
    %18 = vector.extract_strided_slice %11 {offsets = [0, 128], sizes = [8, 128], strides = [1, 1]} : vector<8x512xf32> to vector<8x128xf32>
    %19 = arith.negf %18 : vector<8x128xf32>
    %20 = math.exp %19 : vector<8x128xf32>
    %cst_10 = arith.constant 1.000000e+00 : f32
    %21 = vector.broadcast %cst_10 : f32 to vector<8x128xf32>
    %22 = arith.addf %21, %20 : vector<8x128xf32>
    %23 = arith.divf %21, %22 : vector<8x128xf32>
    %24 = vector.extract_strided_slice %11 {offsets = [0, 256], sizes = [8, 128], strides = [1, 1]} : vector<8x512xf32> to vector<8x128xf32>
    %25 = math.tanh %24 : vector<8x128xf32>
    %26 = vector.extract_strided_slice %11 {offsets = [0, 384], sizes = [8, 128], strides = [1, 1]} : vector<8x512xf32> to vector<8x128xf32>
    %27 = arith.negf %26 : vector<8x128xf32>
    %28 = math.exp %27 : vector<8x128xf32>
    %cst_11 = arith.constant 1.000000e+00 : f32
    %29 = vector.broadcast %cst_11 : f32 to vector<8x128xf32>
    %30 = arith.addf %29, %28 : vector<8x128xf32>
    %31 = arith.divf %29, %30 : vector<8x128xf32>
    %32 = arith.mulf %23, %5 : vector<8x128xf32>
    %33 = arith.mulf %17, %25 : vector<8x128xf32>
    %34 = arith.addf %32, %33 : vector<8x128xf32>
    %35 = math.tanh %34 : vector<8x128xf32>
    %36 = arith.mulf %31, %35 : vector<8x128xf32>
    %c1_i32 = arith.constant 1 : i32
    %37 = arith.index_cast %c1_i32 : i32 to index
    %c0_12 = arith.constant 0 : index
    %c0_13 = arith.constant 0 : index
    %38 = vector.load %arg1[%37, %c0_12, %c0_13] : memref<8x8x512xf32, #tpu.memory_space<vmem>>, vector<1x8x512xf32>
    %39 = vector.shape_cast %38 : vector<1x8x512xf32> to vector<8x512xf32>
    %40 = arith.truncf %36 : vector<8x128xf32> to vector<8x128xbf16>
    %cst_14 = arith.constant dense<0.000000e+00> : vector<8x512xf32>
    %41 = tpu.matmul %40, %3, %cst_14 {dimension_numbers = #tpu.dot_dimension_numbers<[1], [0], [0], [1], [0, 0, 1, 1], [], []>} : vector<8x128xbf16>, vector<128x512xbf16>, vector<8x512xf32> -> vector<8x512xf32>
    %42 = arith.addf %39, %41 : vector<8x512xf32>
    %43 = vector.extract_strided_slice %42 {offsets = [0, 0], sizes = [8, 128], strides = [1, 1]} : vector<8x512xf32> to vector<8x128xf32>
    %44 = arith.negf %43 : vector<8x128xf32>
    %45 = math.exp %44 : vector<8x128xf32>
    %cst_15 = arith.constant 1.000000e+00 : f32
    %46 = vector.broadcast %cst_15 : f32 to vector<8x128xf32>
    %47 = arith.addf %46, %45 : vector<8x128xf32>
    %48 = arith.divf %46, %47 : vector<8x128xf32>
    %49 = vector.extract_strided_slice %42 {offsets = [0, 128], sizes = [8, 128], strides = [1, 1]} : vector<8x512xf32> to vector<8x128xf32>
    %50 = arith.negf %49 : vector<8x128xf32>
    %51 = math.exp %50 : vector<8x128xf32>
    %cst_16 = arith.constant 1.000000e+00 : f32
    %52 = vector.broadcast %cst_16 : f32 to vector<8x128xf32>
    %53 = arith.addf %52, %51 : vector<8x128xf32>
    %54 = arith.divf %52, %53 : vector<8x128xf32>
    %55 = vector.extract_strided_slice %42 {offsets = [0, 256], sizes = [8, 128], strides = [1, 1]} : vector<8x512xf32> to vector<8x128xf32>
    %56 = math.tanh %55 : vector<8x128xf32>
    %57 = vector.extract_strided_slice %42 {offsets = [0, 384], sizes = [8, 128], strides = [1, 1]} : vector<8x512xf32> to vector<8x128xf32>
    %58 = arith.negf %57 : vector<8x128xf32>
    %59 = math.exp %58 : vector<8x128xf32>
    %cst_17 = arith.constant 1.000000e+00 : f32
    %60 = vector.broadcast %cst_17 : f32 to vector<8x128xf32>
    %61 = arith.addf %60, %59 : vector<8x128xf32>
    %62 = arith.divf %60, %61 : vector<8x128xf32>
    %63 = arith.mulf %54, %34 : vector<8x128xf32>
    %64 = arith.mulf %48, %56 : vector<8x128xf32>
    %65 = arith.addf %63, %64 : vector<8x128xf32>
    %66 = math.tanh %65 : vector<8x128xf32>
    %67 = arith.mulf %62, %66 : vector<8x128xf32>
    %c2_i32 = arith.constant 2 : i32
    %68 = arith.index_cast %c2_i32 : i32 to index
    %c0_18 = arith.constant 0 : index
    %c0_19 = arith.constant 0 : index
    %69 = vector.load %arg1[%68, %c0_18, %c0_19] : memref<8x8x512xf32, #tpu.memory_space<vmem>>, vector<1x8x512xf32>
    %70 = vector.shape_cast %69 : vector<1x8x512xf32> to vector<8x512xf32>
    %71 = arith.truncf %67 : vector<8x128xf32> to vector<8x128xbf16>
    %cst_20 = arith.constant dense<0.000000e+00> : vector<8x512xf32>
    %72 = tpu.matmul %71, %3, %cst_20 {dimension_numbers = #tpu.dot_dimension_numbers<[1], [0], [0], [1], [0, 0, 1, 1], [], []>} : vector<8x128xbf16>, vector<128x512xbf16>, vector<8x512xf32> -> vector<8x512xf32>
    %73 = arith.addf %70, %72 : vector<8x512xf32>
    %74 = vector.extract_strided_slice %73 {offsets = [0, 0], sizes = [8, 128], strides = [1, 1]} : vector<8x512xf32> to vector<8x128xf32>
    %75 = arith.negf %74 : vector<8x128xf32>
    %76 = math.exp %75 : vector<8x128xf32>
    %cst_21 = arith.constant 1.000000e+00 : f32
    %77 = vector.broadcast %cst_21 : f32 to vector<8x128xf32>
    %78 = arith.addf %77, %76 : vector<8x128xf32>
    %79 = arith.divf %77, %78 : vector<8x128xf32>
    %80 = vector.extract_strided_slice %73 {offsets = [0, 128], sizes = [8, 128], strides = [1, 1]} : vector<8x512xf32> to vector<8x128xf32>
    %81 = arith.negf %80 : vector<8x128xf32>
    %82 = math.exp %81 : vector<8x128xf32>
    %cst_22 = arith.constant 1.000000e+00 : f32
    %83 = vector.broadcast %cst_22 : f32 to vector<8x128xf32>
    %84 = arith.addf %83, %82 : vector<8x128xf32>
    %85 = arith.divf %83, %84 : vector<8x128xf32>
    %86 = vector.extract_strided_slice %73 {offsets = [0, 256], sizes = [8, 128], strides = [1, 1]} : vector<8x512xf32> to vector<8x128xf32>
    %87 = math.tanh %86 : vector<8x128xf32>
    %88 = vector.extract_strided_slice %73 {offsets = [0, 384], sizes = [8, 128], strides = [1, 1]} : vector<8x512xf32> to vector<8x128xf32>
    %89 = arith.negf %88 : vector<8x128xf32>
    %90 = math.exp %89 : vector<8x128xf32>
    %cst_23 = arith.constant 1.000000e+00 : f32
    %91 = vector.broadcast %cst_23 : f32 to vector<8x128xf32>
    %92 = arith.addf %91, %90 : vector<8x128xf32>
    %93 = arith.divf %91, %92 : vector<8x128xf32>
    %94 = arith.mulf %85, %65 : vector<8x128xf32>
    %95 = arith.mulf %79, %87 : vector<8x128xf32>
    %96 = arith.addf %94, %95 : vector<8x128xf32>
    %97 = math.tanh %96 : vector<8x128xf32>
    %98 = arith.mulf %93, %97 : vector<8x128xf32>
    %c3_i32 = arith.constant 3 : i32
    %99 = arith.index_cast %c3_i32 : i32 to index
    %c0_24 = arith.constant 0 : index
    %c0_25 = arith.constant 0 : index
    %100 = vector.load %arg1[%99, %c0_24, %c0_25] : memref<8x8x512xf32, #tpu.memory_space<vmem>>, vector<1x8x512xf32>
    %101 = vector.shape_cast %100 : vector<1x8x512xf32> to vector<8x512xf32>
    %102 = arith.truncf %98 : vector<8x128xf32> to vector<8x128xbf16>
    %cst_26 = arith.constant dense<0.000000e+00> : vector<8x512xf32>
    %103 = tpu.matmul %102, %3, %cst_26 {dimension_numbers = #tpu.dot_dimension_numbers<[1], [0], [0], [1], [0, 0, 1, 1], [], []>} : vector<8x128xbf16>, vector<128x512xbf16>, vector<8x512xf32> -> vector<8x512xf32>
    %104 = arith.addf %101, %103 : vector<8x512xf32>
    %105 = vector.extract_strided_slice %104 {offsets = [0, 0], sizes = [8, 128], strides = [1, 1]} : vector<8x512xf32> to vector<8x128xf32>
    %106 = arith.negf %105 : vector<8x128xf32>
    %107 = math.exp %106 : vector<8x128xf32>
    %cst_27 = arith.constant 1.000000e+00 : f32
    %108 = vector.broadcast %cst_27 : f32 to vector<8x128xf32>
    %109 = arith.addf %108, %107 : vector<8x128xf32>
    %110 = arith.divf %108, %109 : vector<8x128xf32>
    %111 = vector.extract_strided_slice %104 {offsets = [0, 128], sizes = [8, 128], strides = [1, 1]} : vector<8x512xf32> to vector<8x128xf32>
    %112 = arith.negf %111 : vector<8x128xf32>
    %113 = math.exp %112 : vector<8x128xf32>
    %cst_28 = arith.constant 1.000000e+00 : f32
    %114 = vector.broadcast %cst_28 : f32 to vector<8x128xf32>
    %115 = arith.addf %114, %113 : vector<8x128xf32>
    %116 = arith.divf %114, %115 : vector<8x128xf32>
    %117 = vector.extract_strided_slice %104 {offsets = [0, 256], sizes = [8, 128], strides = [1, 1]} : vector<8x512xf32> to vector<8x128xf32>
    %118 = math.tanh %117 : vector<8x128xf32>
    %119 = vector.extract_strided_slice %104 {offsets = [0, 384], sizes = [8, 128], strides = [1, 1]} : vector<8x512xf32> to vector<8x128xf32>
    %120 = arith.negf %119 : vector<8x128xf32>
    %121 = math.exp %120 : vector<8x128xf32>
    %cst_29 = arith.constant 1.000000e+00 : f32
    %122 = vector.broadcast %cst_29 : f32 to vector<8x128xf32>
    %123 = arith.addf %122, %121 : vector<8x128xf32>
    %124 = arith.divf %122, %123 : vector<8x128xf32>
    %125 = arith.mulf %116, %96 : vector<8x128xf32>
    %126 = arith.mulf %110, %118 : vector<8x128xf32>
    %127 = arith.addf %125, %126 : vector<8x128xf32>
    %128 = math.tanh %127 : vector<8x128xf32>
    %129 = arith.mulf %124, %128 : vector<8x128xf32>
    %c4_i32 = arith.constant 4 : i32
    %130 = arith.index_cast %c4_i32 : i32 to index
    %c0_30 = arith.constant 0 : index
    %c0_31 = arith.constant 0 : index
    %131 = vector.load %arg1[%130, %c0_30, %c0_31] : memref<8x8x512xf32, #tpu.memory_space<vmem>>, vector<1x8x512xf32>
    %132 = vector.shape_cast %131 : vector<1x8x512xf32> to vector<8x512xf32>
    %133 = arith.truncf %129 : vector<8x128xf32> to vector<8x128xbf16>
    %cst_32 = arith.constant dense<0.000000e+00> : vector<8x512xf32>
    %134 = tpu.matmul %133, %3, %cst_32 {dimension_numbers = #tpu.dot_dimension_numbers<[1], [0], [0], [1], [0, 0, 1, 1], [], []>} : vector<8x128xbf16>, vector<128x512xbf16>, vector<8x512xf32> -> vector<8x512xf32>
    %135 = arith.addf %132, %134 : vector<8x512xf32>
    %136 = vector.extract_strided_slice %135 {offsets = [0, 0], sizes = [8, 128], strides = [1, 1]} : vector<8x512xf32> to vector<8x128xf32>
    %137 = arith.negf %136 : vector<8x128xf32>
    %138 = math.exp %137 : vector<8x128xf32>
    %cst_33 = arith.constant 1.000000e+00 : f32
    %139 = vector.broadcast %cst_33 : f32 to vector<8x128xf32>
    %140 = arith.addf %139, %138 : vector<8x128xf32>
    %141 = arith.divf %139, %140 : vector<8x128xf32>
    %142 = vector.extract_strided_slice %135 {offsets = [0, 128], sizes = [8, 128], strides = [1, 1]} : vector<8x512xf32> to vector<8x128xf32>
    %143 = arith.negf %142 : vector<8x128xf32>
    %144 = math.exp %143 : vector<8x128xf32>
    %cst_34 = arith.constant 1.000000e+00 : f32
    %145 = vector.broadcast %cst_34 : f32 to vector<8x128xf32>
    %146 = arith.addf %145, %144 : vector<8x128xf32>
    %147 = arith.divf %145, %146 : vector<8x128xf32>
    %148 = vector.extract_strided_slice %135 {offsets = [0, 256], sizes = [8, 128], strides = [1, 1]} : vector<8x512xf32> to vector<8x128xf32>
    %149 = math.tanh %148 : vector<8x128xf32>
    %150 = vector.extract_strided_slice %135 {offsets = [0, 384], sizes = [8, 128], strides = [1, 1]} : vector<8x512xf32> to vector<8x128xf32>
    %151 = arith.negf %150 : vector<8x128xf32>
    %152 = math.exp %151 : vector<8x128xf32>
    %cst_35 = arith.constant 1.000000e+00 : f32
    %153 = vector.broadcast %cst_35 : f32 to vector<8x128xf32>
    %154 = arith.addf %153, %152 : vector<8x128xf32>
    %155 = arith.divf %153, %154 : vector<8x128xf32>
    %156 = arith.mulf %147, %127 : vector<8x128xf32>
    %157 = arith.mulf %141, %149 : vector<8x128xf32>
    %158 = arith.addf %156, %157 : vector<8x128xf32>
    %159 = math.tanh %158 : vector<8x128xf32>
    %160 = arith.mulf %155, %159 : vector<8x128xf32>
    %c5_i32 = arith.constant 5 : i32
    %161 = arith.index_cast %c5_i32 : i32 to index
    %c0_36 = arith.constant 0 : index
    %c0_37 = arith.constant 0 : index
    %162 = vector.load %arg1[%161, %c0_36, %c0_37] : memref<8x8x512xf32, #tpu.memory_space<vmem>>, vector<1x8x512xf32>
    %163 = vector.shape_cast %162 : vector<1x8x512xf32> to vector<8x512xf32>
    %164 = arith.truncf %160 : vector<8x128xf32> to vector<8x128xbf16>
    %cst_38 = arith.constant dense<0.000000e+00> : vector<8x512xf32>
    %165 = tpu.matmul %164, %3, %cst_38 {dimension_numbers = #tpu.dot_dimension_numbers<[1], [0], [0], [1], [0, 0, 1, 1], [], []>} : vector<8x128xbf16>, vector<128x512xbf16>, vector<8x512xf32> -> vector<8x512xf32>
    %166 = arith.addf %163, %165 : vector<8x512xf32>
    %167 = vector.extract_strided_slice %166 {offsets = [0, 0], sizes = [8, 128], strides = [1, 1]} : vector<8x512xf32> to vector<8x128xf32>
    %168 = arith.negf %167 : vector<8x128xf32>
    %169 = math.exp %168 : vector<8x128xf32>
    %cst_39 = arith.constant 1.000000e+00 : f32
    %170 = vector.broadcast %cst_39 : f32 to vector<8x128xf32>
    %171 = arith.addf %170, %169 : vector<8x128xf32>
    %172 = arith.divf %170, %171 : vector<8x128xf32>
    %173 = vector.extract_strided_slice %166 {offsets = [0, 128], sizes = [8, 128], strides = [1, 1]} : vector<8x512xf32> to vector<8x128xf32>
    %174 = arith.negf %173 : vector<8x128xf32>
    %175 = math.exp %174 : vector<8x128xf32>
    %cst_40 = arith.constant 1.000000e+00 : f32
    %176 = vector.broadcast %cst_40 : f32 to vector<8x128xf32>
    %177 = arith.addf %176, %175 : vector<8x128xf32>
    %178 = arith.divf %176, %177 : vector<8x128xf32>
    %179 = vector.extract_strided_slice %166 {offsets = [0, 256], sizes = [8, 128], strides = [1, 1]} : vector<8x512xf32> to vector<8x128xf32>
    %180 = math.tanh %179 : vector<8x128xf32>
    %181 = vector.extract_strided_slice %166 {offsets = [0, 384], sizes = [8, 128], strides = [1, 1]} : vector<8x512xf32> to vector<8x128xf32>
    %182 = arith.negf %181 : vector<8x128xf32>
    %183 = math.exp %182 : vector<8x128xf32>
    %cst_41 = arith.constant 1.000000e+00 : f32
    %184 = vector.broadcast %cst_41 : f32 to vector<8x128xf32>
    %185 = arith.addf %184, %183 : vector<8x128xf32>
    %186 = arith.divf %184, %185 : vector<8x128xf32>
    %187 = arith.mulf %178, %158 : vector<8x128xf32>
    %188 = arith.mulf %172, %180 : vector<8x128xf32>
    %189 = arith.addf %187, %188 : vector<8x128xf32>
    %190 = math.tanh %189 : vector<8x128xf32>
    %191 = arith.mulf %186, %190 : vector<8x128xf32>
    %c6_i32 = arith.constant 6 : i32
    %192 = arith.index_cast %c6_i32 : i32 to index
    %c0_42 = arith.constant 0 : index
    %c0_43 = arith.constant 0 : index
    %193 = vector.load %arg1[%192, %c0_42, %c0_43] : memref<8x8x512xf32, #tpu.memory_space<vmem>>, vector<1x8x512xf32>
    %194 = vector.shape_cast %193 : vector<1x8x512xf32> to vector<8x512xf32>
    %195 = arith.truncf %191 : vector<8x128xf32> to vector<8x128xbf16>
    %cst_44 = arith.constant dense<0.000000e+00> : vector<8x512xf32>
    %196 = tpu.matmul %195, %3, %cst_44 {dimension_numbers = #tpu.dot_dimension_numbers<[1], [0], [0], [1], [0, 0, 1, 1], [], []>} : vector<8x128xbf16>, vector<128x512xbf16>, vector<8x512xf32> -> vector<8x512xf32>
    %197 = arith.addf %194, %196 : vector<8x512xf32>
    %198 = vector.extract_strided_slice %197 {offsets = [0, 0], sizes = [8, 128], strides = [1, 1]} : vector<8x512xf32> to vector<8x128xf32>
    %199 = arith.negf %198 : vector<8x128xf32>
    %200 = math.exp %199 : vector<8x128xf32>
    %cst_45 = arith.constant 1.000000e+00 : f32
    %201 = vector.broadcast %cst_45 : f32 to vector<8x128xf32>
    %202 = arith.addf %201, %200 : vector<8x128xf32>
    %203 = arith.divf %201, %202 : vector<8x128xf32>
    %204 = vector.extract_strided_slice %197 {offsets = [0, 128], sizes = [8, 128], strides = [1, 1]} : vector<8x512xf32> to vector<8x128xf32>
    %205 = arith.negf %204 : vector<8x128xf32>
    %206 = math.exp %205 : vector<8x128xf32>
    %cst_46 = arith.constant 1.000000e+00 : f32
    %207 = vector.broadcast %cst_46 : f32 to vector<8x128xf32>
    %208 = arith.addf %207, %206 : vector<8x128xf32>
    %209 = arith.divf %207, %208 : vector<8x128xf32>
    %210 = vector.extract_strided_slice %197 {offsets = [0, 256], sizes = [8, 128], strides = [1, 1]} : vector<8x512xf32> to vector<8x128xf32>
    %211 = math.tanh %210 : vector<8x128xf32>
    %212 = vector.extract_strided_slice %197 {offsets = [0, 384], sizes = [8, 128], strides = [1, 1]} : vector<8x512xf32> to vector<8x128xf32>
    %213 = arith.negf %212 : vector<8x128xf32>
    %214 = math.exp %213 : vector<8x128xf32>
    %cst_47 = arith.constant 1.000000e+00 : f32
    %215 = vector.broadcast %cst_47 : f32 to vector<8x128xf32>
    %216 = arith.addf %215, %214 : vector<8x128xf32>
    %217 = arith.divf %215, %216 : vector<8x128xf32>
    %218 = arith.mulf %209, %189 : vector<8x128xf32>
    %219 = arith.mulf %203, %211 : vector<8x128xf32>
    %220 = arith.addf %218, %219 : vector<8x128xf32>
    %221 = math.tanh %220 : vector<8x128xf32>
    %222 = arith.mulf %217, %221 : vector<8x128xf32>
    %c7_i32 = arith.constant 7 : i32
    %223 = arith.index_cast %c7_i32 : i32 to index
    %c0_48 = arith.constant 0 : index
    %c0_49 = arith.constant 0 : index
    %224 = vector.load %arg1[%223, %c0_48, %c0_49] : memref<8x8x512xf32, #tpu.memory_space<vmem>>, vector<1x8x512xf32>
    %225 = vector.shape_cast %224 : vector<1x8x512xf32> to vector<8x512xf32>
    %226 = arith.truncf %222 : vector<8x128xf32> to vector<8x128xbf16>
    %cst_50 = arith.constant dense<0.000000e+00> : vector<8x512xf32>
    %227 = tpu.matmul %226, %3, %cst_50 {dimension_numbers = #tpu.dot_dimension_numbers<[1], [0], [0], [1], [0, 0, 1, 1], [], []>} : vector<8x128xbf16>, vector<128x512xbf16>, vector<8x512xf32> -> vector<8x512xf32>
    %228 = arith.addf %225, %227 : vector<8x512xf32>
    %229 = vector.extract_strided_slice %228 {offsets = [0, 0], sizes = [8, 128], strides = [1, 1]} : vector<8x512xf32> to vector<8x128xf32>
    %230 = arith.negf %229 : vector<8x128xf32>
    %231 = math.exp %230 : vector<8x128xf32>
    %cst_51 = arith.constant 1.000000e+00 : f32
    %232 = vector.broadcast %cst_51 : f32 to vector<8x128xf32>
    %233 = arith.addf %232, %231 : vector<8x128xf32>
    %234 = arith.divf %232, %233 : vector<8x128xf32>
    %235 = vector.extract_strided_slice %228 {offsets = [0, 128], sizes = [8, 128], strides = [1, 1]} : vector<8x512xf32> to vector<8x128xf32>
    %236 = arith.negf %235 : vector<8x128xf32>
    %237 = math.exp %236 : vector<8x128xf32>
    %cst_52 = arith.constant 1.000000e+00 : f32
    %238 = vector.broadcast %cst_52 : f32 to vector<8x128xf32>
    %239 = arith.addf %238, %237 : vector<8x128xf32>
    %240 = arith.divf %238, %239 : vector<8x128xf32>
    %241 = vector.extract_strided_slice %228 {offsets = [0, 256], sizes = [8, 128], strides = [1, 1]} : vector<8x512xf32> to vector<8x128xf32>
    %242 = math.tanh %241 : vector<8x128xf32>
    %243 = vector.extract_strided_slice %228 {offsets = [0, 384], sizes = [8, 128], strides = [1, 1]} : vector<8x512xf32> to vector<8x128xf32>
    %244 = arith.negf %243 : vector<8x128xf32>
    %245 = math.exp %244 : vector<8x128xf32>
    %cst_53 = arith.constant 1.000000e+00 : f32
    %246 = vector.broadcast %cst_53 : f32 to vector<8x128xf32>
    %247 = arith.addf %246, %245 : vector<8x128xf32>
    %248 = arith.divf %246, %247 : vector<8x128xf32>
    %249 = arith.mulf %240, %220 : vector<8x128xf32>
    %250 = arith.mulf %234, %242 : vector<8x128xf32>
    %251 = arith.addf %249, %250 : vector<8x128xf32>
    %252 = math.tanh %251 : vector<8x128xf32>
    %253 = arith.mulf %248, %252 : vector<8x128xf32>
    %c8_i32 = arith.constant 8 : i32
    %c0_54 = arith.constant 0 : index
    %c0_55 = arith.constant 0 : index
    %254 = vector.load %arg4[%c0_54, %c0_55] : memref<8x128xf32, #tpu.memory_space<vmem>>, vector<8x128xf32>
    tpu.vector_store %arg4[%c0_54, %c0_55], %253 {strides = array<i32>} : memref<8x128xf32, #tpu.memory_space<vmem>>, vector<8x128xf32>,
    %c0_56 = arith.constant 0 : index
    %c0_57 = arith.constant 0 : index
    %255 = vector.load %arg5[%c0_56, %c0_57] : memref<8x128xf32, #tpu.memory_space<vmem>>, vector<8x128xf32>
    tpu.vector_store %arg5[%c0_56, %c0_57], %251 {strides = array<i32>} : memref<8x128xf32, #tpu.memory_space<vmem>>, vector<8x128xf32>,
    %c0_58 = arith.constant 0 : index
    %c0_59 = arith.constant 0 : index
    %256 = vector.load %arg3[%c0_58, %c0_59] : memref<8x128xf32, #tpu.memory_space<vmem>>, vector<8x128xf32>
    tpu.vector_store %arg3[%c0_58, %c0_59], %253 {strides = array<i32>} : memref<8x128xf32, #tpu.memory_space<vmem>>, vector<8x128xf32>,
    return
  }
  func.func @transform_0(%arg0: i32) -> (i32, i32, i32) {
    %c0_i32 = arith.constant 0 : i32
    %c0_i32_0 = arith.constant 0 : i32
    %c0_i32_1 = arith.constant 0 : i32
    return %arg0, %c0_i32, %c0_i32_0 : i32, i32, i32
  }
  func.func @transform_1(%arg0: i32) -> (i32, i32) {
    %c0_i32 = arith.constant 0 : i32
    %c0_i32_0 = arith.constant 0 : i32
    %c0_i32_1 = arith.constant 0 : i32
    return %c0_i32, %c0_i32_0 : i32, i32
  }
  func.func @transform_2(%arg0: i32) -> (i32, i32) {
    %c0_i32 = arith.constant 0 : i32
    %c0_i32_0 = arith.constant 0 : i32
    %c0_i32_1 = arith.constant 0 : i32
    return %c0_i32, %c0_i32_0 : i32, i32
  }
}

</mosaic_0001>

<bundles_post_ra>
// kernel: tpu_custom_call.1
= control target key start
LH: loop header
LB: loop body
LE: loop exit
PB: predicated region body
PF: predicated region fallthrough
CT: control target
= control target key end

     0   :  { %7 = vsyncpa [#allocation5], 0  ;;  %s2042_s0 = inlined_call_operand.hbm [shape: f32[8,8,512], index: 0, kind: input, shape index: {}]   ;;  %s2043_s1 = inlined_call_operand.hbm [shape: bf16[128,512], index: 1, kind: input, shape index: {}]   ;;  %s2044_s2 = inlined_call_operand.hbm [shape: f32[8,128], index: 2, kind: output, shape index: {}]  }
   0x1   :  { %8 = vsyncpa [#allocation8], 0 }
   0x2   :  { %9 = vsyncpa [#allocation6], 0  ;;  %s14_s11 = sshll.u32 %s2042_s0, 4  ;;  %s1662_s12 = smov [#allocation4]   ;;  %s15_s11 = int_to_ptr.hbm [resolvable:$true] %s14_s11 }
   0x3   :  { %s16_s13 = sshll.u32 %s1662_s12, 4  ;;  %s27_s16 = sshll.u32 %s2043_s1, 4  ;;  %s17_s13 = int_to_ptr.vmem [resolvable:$true] %s16_s13  ;;  %s28_s16 = int_to_ptr.hbm [resolvable:$true] %s27_s16 }
   0x4   :  { %s1663_s17 = smov 512   ;;  %s1664_s18 = smov 32  }
   0x5   :  { %22 = dma.hbm_to_vmem [thread:$0]  %s15_s11, 4096, %s17_s13, [#allocation5], %s1663_s17, %s1663_s17, %s1664_s18  }
   0x6   :  { %s1665_s19 = smov [#allocation7]   ;;  %s1666_s21 = smov 256  }
   0x7   :  { %s29_s20 = sshll.u32 %s1665_s19, 4  ;;  %s1667_s22 = smov 16   ;;  %s30_s20 = int_to_ptr.vmem [resolvable:$true] %s29_s20 }
   0x8   :  { %35 = dma.hbm_to_vmem [thread:$0]  %s28_s16, 4096, %s30_s20, [#allocation8], %s1666_s21, %s1666_s21, %s1667_s22  }
   0x9   :  { %1656 = dma.done.wait [#allocation5], 4096  }
   0xa   :  { %1657 = vsyncadd [#allocation5], 4294963200 }
   0xb   :  { %1658 = dma.done.wait [#allocation8], 4096  }
   0xc   :  { %1659 = vsyncadd [#allocation8], 4294963200  ;;  %v1378_v0 = vld [vmem:[#allocation7 + $0xe0] sm:$0xf]  ;;  %v1446_v1 = vld [vmem:[#allocation7 + $0xec] sm:$0xf0] }
   0xd   :  { %v1444_v2 = vld [vmem:[#allocation7 + $0xe4] sm:$0xf]  ;;  %v1691_v3 = vor.u32 %v1446_v1, %v1378_v0  ;;  %v1380_v4 = vld [vmem:[#allocation7 + $0xf0] sm:$0xf0]  ;;  %v1445_v5 = vld [vmem:[#allocation7 + $0xec] sm:$0xf] }
   0xe   :  { %v1388_v6 = vld [vmem:[#allocation7 + $0xf8] sm:$0xf0]  ;;  %v1693_v7 = vor.u32 %v1444_v2, %v1380_v4  ;;  %v1362_v9 = vld [vmem:[#allocation7 + $0xc0] sm:$0xf]  ;;  %v1442_v10 = vld [vmem:[#allocation7 + $0xcc] sm:$0xf0] }
   0xf   :  { %v1695_v8 = vor.u32 %v1445_v5, %v1388_v6  ;;  %v1440_v11 = vld [vmem:[#allocation7 + $0xc4] sm:$0xf]  ;;  %249 = vmatpush.bf16.msra.mxu0 %v1691_v3  ;;  %v1698_v12 = vor.u32 %v1442_v10, %v1362_v9  ;;  %v1364_v13 = vld [vmem:[#allocation7 + $0xd0] sm:$0xf0]  ;;  %v1441_v14 = vld [vmem:[#allocation7 + $0xcc] sm:$0xf] }
  0x10   :  { %v1372_v15 = vld [vmem:[#allocation7 + $0xd8] sm:$0xf0]  ;;  %262 = vmatpush.bf16.msra.mxu1 %v1693_v7  ;;  %v1702_v16 = vor.u32 %v1440_v11, %v1364_v13  ;;  %v1386_v18 = vld [vmem:[#allocation7 + $0xe8] sm:$0xf]  ;;  %v1447_v19 = vld [vmem:[#allocation7 + $0xf4] sm:$0xf0] }
  0x11   :  { %288 = vmatpush.bf16.msra.mxu3 %v1695_v8  ;;  %v1704_v17 = vor.u32 %v1441_v14, %v1372_v15  ;;  %v1346_v20 = vld [vmem:[#allocation7 + $0xa0] sm:$0xf]  ;;  %v1706_v21 = vor.u32 %v1447_v19, %v1386_v18  ;;  %v1438_v22 = vld [vmem:[#allocation7 + $0xac] sm:$0xf0]  ;;  %v1436_v23 = vld [vmem:[#allocation7 + $0xa4] sm:$0xf] }
  0x12   :  { %v1348_v24 = vld [vmem:[#allocation7 + $0xb0] sm:$0xf0]  ;;  %v1437_v25 = vld [vmem:[#allocation7 + $0xac] sm:$0xf]  ;;  %v1356_v26 = vld [vmem:[#allocation7 + $0xb8] sm:$0xf0]  ;;  %v1710_v28 = vor.u32 %v1438_v22, %v1346_v20 }
  0x13   :  { %v1370_v27 = vld [vmem:[#allocation7 + $0xc8] sm:$0xf]  ;;  %250 = vmatpush.bf16.msra.mxu0 %v1698_v12  ;;  %275 = vmatpush.bf16.msra.mxu2 %v1706_v21  ;;  %v1443_v29 = vld [vmem:[#allocation7 + $0xd4] sm:$0xf0]  ;;  %v1330_v30 = vld [vmem:[#allocation7 + $0x80] sm:$0xf]  ;;  %v1714_v32 = vor.u32 %v1436_v23, %v1348_v24  ;;  %v1716_v33 = vor.u32 %v1437_v25, %v1356_v26 }
  0x14   :  { %v1434_v31 = vld [vmem:[#allocation7 + $0x8c] sm:$0xf0]  ;;  %263 = vmatpush.bf16.msra.mxu1 %v1702_v16  ;;  %v1718_v34 = vor.u32 %v1443_v29, %v1370_v27  ;;  %v1432_v35 = vld [vmem:[#allocation7 + $0x84] sm:$0xf]  ;;  %v1332_v36 = vld [vmem:[#allocation7 + $0x90] sm:$0xf0] }
  0x15   :  { %289 = vmatpush.bf16.msra.mxu3 %v1704_v17  ;;  %v1433_v37 = vld [vmem:[#allocation7 + $0x8c] sm:$0xf]  ;;  %v1340_v38 = vld [vmem:[#allocation7 + $0x98] sm:$0xf0]  ;;  %v1354_v39 = vld [vmem:[#allocation7 + $0xa8] sm:$0xf]  ;;  %v1722_v41 = vor.u32 %v1434_v31, %v1330_v30  ;;  %v1728_v45 = vor.u32 %v1432_v35, %v1332_v36 }
  0x16   :  { %v1439_v40 = vld [vmem:[#allocation7 + $0xb4] sm:$0xf0]  ;;  %v1314_v43 = vld [vmem:[#allocation7 + $0x60] sm:$0xf]  ;;  %v1430_v44 = vld [vmem:[#allocation7 + $0x6c] sm:$0xf0]  ;;  %v1730_v46 = vor.u32 %v1433_v37, %v1340_v38 }
  0x17   :  { %251 = vmatpush.bf16.msra.mxu0 %v1710_v28  ;;  %276 = vmatpush.bf16.msra.mxu2 %v1718_v34  ;;  %v1724_v42 = vor.u32 %v1439_v40, %v1354_v39  ;;  %v1428_v47 = vld [vmem:[#allocation7 + $0x64] sm:$0xf]  ;;  %v1338_v48 = vld [vmem:[#allocation7 + $0x88] sm:$0xf]  ;;  %v1435_v49 = vld [vmem:[#allocation7 + $0x94] sm:$0xf0]  ;;  %v1734_v53 = vor.u32 %v1430_v44, %v1314_v43 }
  0x18   :  { %264 = vmatpush.bf16.msra.mxu1 %v1714_v32  ;;  %v1316_v50 = vld [vmem:[#allocation7 + $0x70] sm:$0xf0]  ;;  %v1429_v51 = vld [vmem:[#allocation7 + $0x6c] sm:$0xf]  ;;  %v1324_v52 = vld [vmem:[#allocation7 + $0x78] sm:$0xf0]  ;;  %v1736_v54 = vor.u32 %v1435_v49, %v1338_v48 }
  0x19   :  { %290 = vmatpush.bf16.msra.mxu3 %v1716_v33  ;;  %v1298_v55 = vld [vmem:[#allocation7 + $0x40] sm:$0xf]  ;;  %v1426_v56 = vld [vmem:[#allocation7 + $0x4c] sm:$0xf0]  ;;  %v1740_v57 = vor.u32 %v1428_v47, %v1316_v50  ;;  %v1742_v58 = vor.u32 %v1429_v51, %v1324_v52  ;;  %v1424_v59 = vld [vmem:[#allocation7 + $0x44] sm:$0xf] }
  0x1a   :  { %v1322_v60 = vld [vmem:[#allocation7 + $0x68] sm:$0xf]  ;;  %v1431_v61 = vld [vmem:[#allocation7 + $0x74] sm:$0xf0]  ;;  %v1300_v62 = vld [vmem:[#allocation7 + $0x50] sm:$0xf0]  ;;  %v1746_v1 = vor.u32 %v1426_v56, %v1298_v55 }
  0x1b   :  { %252 = vmatpush.bf16.msra.mxu0 %v1722_v41  ;;  %277 = vmatpush.bf16.msra.mxu2 %v1724_v42  ;;  %v1425_v63 = vld [vmem:[#allocation7 + $0x4c] sm:$0xf]  ;;  %v1308_v0 = vld [vmem:[#allocation7 + $0x58] sm:$0xf0]  ;;  %v1748_v2 = vor.u32 %v1431_v61, %v1322_v60  ;;  %v1282_v4 = vld [vmem:[#allocation7 + $0x20] sm:$0xf]  ;;  %v1752_v6 = vor.u32 %v1424_v59, %v1300_v62 }
  0x1c   :  { %265 = vmatpush.bf16.msra.mxu1 %v1728_v45  ;;  %v1422_v5 = vld [vmem:[#allocation7 + $0x2c] sm:$0xf0]  ;;  %v1754_v9 = vor.u32 %v1425_v63, %v1308_v0  ;;  %v1420_v10 = vld [vmem:[#allocation7 + $0x24] sm:$0xf]  ;;  %v1306_v11 = vld [vmem:[#allocation7 + $0x48] sm:$0xf] }
  0x1d   :  { %291 = vmatpush.bf16.msra.mxu3 %v1730_v46  ;;  %v1427_v13 = vld [vmem:[#allocation7 + $0x54] sm:$0xf0]  ;;  %v1284_v14 = vld [vmem:[#allocation7 + $0x30] sm:$0xf0]  ;;  %v1421_v15 = vld [vmem:[#allocation7 + $0x2c] sm:$0xf]  ;;  %v1758_v19 = vor.u32 %v1422_v5, %v1282_v4 }
  0x1e   :  { %v1292_v18 = vld [vmem:[#allocation7 + $0x38] sm:$0xf0]  ;;  %v1760_v20 = vor.u32 %v1427_v13, %v1306_v11  ;;  %v1266_v22 = vld [vmem:[#allocation7] sm:$0xf]  ;;  %v1418_v23 = vld [vmem:[#allocation7 + $0xc] sm:$0xf0]  ;;  %v1764_v24 = vor.u32 %v1420_v10, %v1284_v14 }
  0x1f   :  { %253 = vmatpush.bf16.msra.mxu0 %v1734_v53  ;;  %278 = vmatpush.bf16.msra.mxu2 %v1736_v54  ;;  %v1766_v25 = vor.u32 %v1421_v15, %v1292_v18  ;;  %v1416_v26 = vld [vmem:[#allocation7 + $0x4] sm:$0xf]  ;;  %v1290_v27 = vld [vmem:[#allocation7 + $0x28] sm:$0xf]  ;;  %v1423_v29 = vld [vmem:[#allocation7 + $0x34] sm:$0xf0]  ;;  %v1770_v36 = vor.u32 %v1418_v23, %v1266_v22 }
  0x20   :  { %266 = vmatpush.bf16.msra.mxu1 %v1740_v57  ;;  %v1268_v30 = vld [vmem:[#allocation7 + $0x10] sm:$0xf0]  ;;  %v1417_v31 = vld [vmem:[#allocation7 + $0xc] sm:$0xf]  ;;  %v1276_v35 = vld [vmem:[#allocation7 + $0x18] sm:$0xf0]  ;;  %v1772_v37 = vor.u32 %v1423_v29, %v1290_v27 }
  0x21   :  { %292 = vmatpush.bf16.msra.mxu3 %v1742_v58  ;;  %v1776_v38 = vor.u32 %v1416_v26, %v1268_v30  ;;  %v1778_v39 = vor.u32 %v1417_v31, %v1276_v35  ;;  %v1274_v40 = vld [vmem:[#allocation7 + $0x8] sm:$0xf]  ;;  %v1419_v43 = vld [vmem:[#allocation7 + $0x14] sm:$0xf0]  ;;  %v1668_v47 = vmov 0.0|0.0   ;;  %v84_v48 = vld [vmem:[#allocation4] sm:$0xff] }
  0x22   :  { %v1784_v44 = vor.u32 %v1419_v43, %v1274_v40  ;;  %v85_v49 = vld [vmem:[#allocation4 + $0x8] sm:$0xff]  ;;  %v87_v60 = vld [vmem:[#allocation4 + $0x18] sm:$0xff]  ;;  %v86_v15 = vld [vmem:[#allocation4 + $0x10] sm:$0xff]  ;;  %s1669_s0 = smov [#allocation9]   ;;  %s1253_s25 = sshll.u32 %s2044_s2, 4  ;;  %s1254_s25 = int_to_ptr.hbm [resolvable:$true] %s1253_s25 }
  0x23   :  { %254 = vmatpush.bf16.msra.mxu0 %v1746_v1  ;;  %279 = vmatpush.bf16.msra.mxu2 %v1748_v2  ;;  %s1251_s1 = sshll.u32 %s1669_s0, 4  ;;  %s1252_s1 = int_to_ptr.vmem [resolvable:$true] %s1251_s1 }
  0x24   :  { %267 = vmatpush.bf16.msra.mxu1 %v1752_v6 }
  0x25   :  { %293 = vmatpush.bf16.msra.mxu3 %v1754_v9 }
  0x27   :  { %255 = vmatpush.bf16.msra.mxu0 %v1758_v19  ;;  %280 = vmatpush.bf16.msra.mxu2 %v1760_v20 }
  0x28   :  { %268 = vmatpush.bf16.msra.mxu1 %v1764_v24 }
  0x29   :  { %294 = vmatpush.bf16.msra.mxu3 %v1766_v25 }
  0x2b   :  { %256 = vmatpush.bf16.msra.mxu0 %v1770_v36  ;;  %281 = vmatpush.bf16.msra.mxu2 %v1772_v37 }
  0x2c   :  { %269 = vmatpush.bf16.msra.mxu1 %v1776_v38 }
  0x2d   :  { %295 = vmatpush.bf16.msra.mxu3 %v1778_v39 }
  0x2e   :  { %257 = vmatmul.bf16.vlgmr.msra.gmra.mxu0 %v1668_v47 }
  0x2f   :  { %374 = vmatpush.bf16.msrb.mxu0 %v1691_v3  ;;  %270 = vmatmul.bf16.vlgmr.msra.gmra.mxu1 %v1668_v47 }
  0x30   :  { %387 = vmatpush.bf16.msrb.mxu1 %v1693_v7  ;;  %296 = vmatmul.bf16.vlgmr.msra.gmra.mxu3 %v1668_v47 }
  0x31   :  { %413 = vmatpush.bf16.msrb.mxu3 %v1695_v8  ;;  %282 = vmatpush.bf16.msra.mxu2 %v1784_v44 }
  0x33   :  { %375 = vmatpush.bf16.msrb.mxu0 %v1698_v12 }
  0x34   :  { %388 = vmatpush.bf16.msrb.mxu1 %v1702_v16  ;;  %283 = vmatmul.bf16.vlgmr.msra.gmra.mxu2 %v1668_v47 }
  0x35   :  { %400 = vmatpush.bf16.msrb.mxu2 %v1706_v21  ;;  %414 = vmatpush.bf16.msrb.mxu3 %v1704_v17 }
  0x37   :  { %376 = vmatpush.bf16.msrb.mxu0 %v1710_v28 }
  0x38   :  { %389 = vmatpush.bf16.msrb.mxu1 %v1714_v32 }
  0x39   :  { %401 = vmatpush.bf16.msrb.mxu2 %v1718_v34  ;;  %415 = vmatpush.bf16.msrb.mxu3 %v1716_v33 }
  0x3b   :  { %377 = vmatpush.bf16.msrb.mxu0 %v1722_v41 }
  0x3c   :  { %390 = vmatpush.bf16.msrb.mxu1 %v1728_v45 }
  0x3d   :  { %402 = vmatpush.bf16.msrb.mxu2 %v1724_v42  ;;  %416 = vmatpush.bf16.msrb.mxu3 %v1730_v46 }
  0x3f   :  { %378 = vmatpush.bf16.msrb.mxu0 %v1734_v53 }
  0x40   :  { %391 = vmatpush.bf16.msrb.mxu1 %v1740_v57 }
  0x41   :  { %403 = vmatpush.bf16.msrb.mxu2 %v1736_v54  ;;  %417 = vmatpush.bf16.msrb.mxu3 %v1742_v58 }
  0x43   :  { %379 = vmatpush.bf16.msrb.mxu0 %v1746_v1 }
  0x44   :  { %392 = vmatpush.bf16.msrb.mxu1 %v1752_v6 }
  0x45   :  { %404 = vmatpush.bf16.msrb.mxu2 %v1748_v2  ;;  %418 = vmatpush.bf16.msrb.mxu3 %v1754_v9 }
  0x47   :  { %380 = vmatpush.bf16.msrb.mxu0 %v1758_v19 }
  0x48   :  { %393 = vmatpush.bf16.msrb.mxu1 %v1764_v24 }
  0x49   :  { %405 = vmatpush.bf16.msrb.mxu2 %v1760_v20  ;;  %419 = vmatpush.bf16.msrb.mxu3 %v1766_v25 }
  0x4b   :  { %381 = vmatpush.bf16.msrb.mxu0 %v1770_v36 }
  0x4c   :  { %394 = vmatpush.bf16.msrb.mxu1 %v1776_v38 }
  0x4d   :  { %406 = vmatpush.bf16.msrb.mxu2 %v1772_v37  ;;  %420 = vmatpush.bf16.msrb.mxu3 %v1778_v39 }
  0x4f   :  { %499 = vmatpush.bf16.msra.mxu0 %v1691_v3 }
  0x50   :  { %512 = vmatpush.bf16.msra.mxu1 %v1693_v7 }
  0x51   :  { %538 = vmatpush.bf16.msra.mxu3 %v1695_v8  ;;  %407 = vmatpush.bf16.msrb.mxu2 %v1784_v44 }
  0x53   :  { %500 = vmatpush.bf16.msra.mxu0 %v1698_v12 }
  0x54   :  { %513 = vmatpush.bf16.msra.mxu1 %v1702_v16 }
  0x55   :  { %525 = vmatpush.bf16.msra.mxu2 %v1706_v21  ;;  %539 = vmatpush.bf16.msra.mxu3 %v1704_v17 }
  0x57   :  { %501 = vmatpush.bf16.msra.mxu0 %v1710_v28 }
  0x58   :  { %514 = vmatpush.bf16.msra.mxu1 %v1714_v32 }
  0x59   :  { %526 = vmatpush.bf16.msra.mxu2 %v1718_v34  ;;  %540 = vmatpush.bf16.msra.mxu3 %v1716_v33 }
  0x5b   :  { %502 = vmatpush.bf16.msra.mxu0 %v1722_v41 }
  0x5c   :  { %515 = vmatpush.bf16.msra.mxu1 %v1728_v45 }
  0x5d   :  { %527 = vmatpush.bf16.msra.mxu2 %v1724_v42  ;;  %541 = vmatpush.bf16.msra.mxu3 %v1730_v46 }
  0x5f   :  { %503 = vmatpush.bf16.msra.mxu0 %v1734_v53 }
  0x60   :  { %516 = vmatpush.bf16.msra.mxu1 %v1740_v57 }
  0x61   :  { %528 = vmatpush.bf16.msra.mxu2 %v1736_v54  ;;  %542 = vmatpush.bf16.msra.mxu3 %v1742_v58 }
  0x63   :  { %504 = vmatpush.bf16.msra.mxu0 %v1746_v1 }
  0x64   :  { %517 = vmatpush.bf16.msra.mxu1 %v1752_v6 }
  0x65   :  { %529 = vmatpush.bf16.msra.mxu2 %v1748_v2  ;;  %543 = vmatpush.bf16.msra.mxu3 %v1754_v9 }
  0x67   :  { %505 = vmatpush.bf16.msra.mxu0 %v1758_v19 }
  0x68   :  { %518 = vmatpush.bf16.msra.mxu1 %v1764_v24 }
  0x69   :  { %530 = vmatpush.bf16.msra.mxu2 %v1760_v20  ;;  %544 = vmatpush.bf16.msra.mxu3 %v1766_v25 }
  0x6b   :  { %506 = vmatpush.bf16.msra.mxu0 %v1770_v36 }
  0x6c   :  { %519 = vmatpush.bf16.msra.mxu1 %v1776_v38 }
  0x6d   :  { %531 = vmatpush.bf16.msra.mxu2 %v1772_v37  ;;  %545 = vmatpush.bf16.msra.mxu3 %v1778_v39 }
  0x71   :  { %532 = vmatpush.bf16.msra.mxu2 %v1784_v44 }
  0xab   :  { %v258_v50 = vpop.f32.mrf.mxu0 }
  0xac   :  { %v301_v51 = vadd.f32 %v258_v50, %v84_v48  ;;  %v271_v52 = vpop.f32.mrf.mxu1 }
  0xad   :  { %v302_v55 = vadd.f32 %v271_v52, %v85_v49 }
  0xae   :  { %v1392_v56 = vmul.f32 -1.442695, %v301_v51 }
  0xaf   :  { %v1393_v59 = vmul.f32 -1.442695, %v302_v55 }
  0xb0   :  { %1456 = vpow2.f32 %v1392_v56 }
  0xb1   :  { %1458 = vpow2.f32 %v1393_v59 }
  0xb3   :  { %v297_v61 = vpop.f32.mrf.mxu3  ;;  %v260_v63 = vpop.f32.mrf.mxu0 }
  0xb4   :  { %v304_v62 = vadd.f32 %v297_v61, %v87_v60  ;;  %v273_v0 = vpop.f32.mrf.mxu1 }
  0xb6   :  { %v1394_v4 = vmul.f32 -1.442695, %v304_v62  ;;  %v1457_v5 = vpop.eup %1456 }
  0xb7   :  { %v284_v10 = vpop.f32.mrf.mxu2  ;;  %v1459_v11 = vpop.eup %1458  ;;  %v308_v13 = vadd.f32 1.0, %v1457_v5 }
  0xb8   :  { %1460 = vpow2.f32 %v1394_v4  ;;  %v327_v14 = vadd.f32 1.0, %v1459_v11  ;;  %v303_v23 = vadd.f32 %v284_v10, %v86_v15 }
  0xb9   :  { %1462 = vrcp.f32 %v308_v13  ;;  %v320_v47 = vand.u32 2147483648, %v308_v13  ;;  %v318_v50 = vand.u32 2147483647, %v308_v13  ;;  %vm314_vm2 = vweird.f32 %v308_v13 }
  0xba   :  { %1464 = vrcp.f32 %v327_v14  ;;  %v339_v48 = vand.u32 2147483648, %v327_v14  ;;  %v337_v52 = vand.u32 2147483647, %v327_v14  ;;  %vm333_vm3 = vweird.f32 %v327_v14 }
  0xbb   :  { %v299_v18 = vpop.f32.mrf.mxu3  ;;  %v321_v61 = vor.u32 1.1754944e-38, %v320_v47  ;;  %vm319_vm5 = vcmp.eq.f32.partialorder %v318_v50, 8.507059e+37  ;;  %v370_v47 = vld [vmem:[#allocation4 + $0x28] sm:$0xff] }
  0xbc   :  { %v340_v63 = vor.u32 1.1754944e-38, %v339_v48  ;;  %vm338_vm7 = vcmp.eq.f32.partialorder %v337_v52, 8.507059e+37 }
  0xbe   :  { %v1461_v22 = vpop.eup %1460 }
  0xbf   :  { %v347_v26 = vadd.f32 1.0, %v1461_v22  ;;  %v286_v27 = vpop.f32.mrf.mxu2  ;;  %v1463_v29 = vpop.eup %1462 }
  0xc0   :  { %v1465_v30 = vpop.eup %1464  ;;  %v310_v31 = vmul.f32 %v1463_v29, %v308_v13  ;;  %vm315_vm0 = vweird.f32 %v1463_v29 }
  0xc1   :  { %1466 = vrcp.f32 %v347_v26  ;;  %v329_v35 = vmul.f32 %v1465_v30, %v327_v14  ;;  %vm334_vm1 = vweird.f32 %v1465_v30  ;;  %vm316_vm4 = vmor %vm314_vm2, %vm315_vm0  ;;  %v359_v14 = vand.u32 2147483648, %v347_v26 }
  0xc2   :  { %1468 = vtanh.f32 %v303_v23  ;;  %v311_v40 = vsub.f32 1.0, %v310_v31  ;;  %vm335_vm6 = vmor %vm333_vm3, %vm334_vm1  ;;  %vm353_vm9 = vweird.f32 %v347_v26  ;;  %v357_v27 = vand.u32 2147483647, %v347_v26 }
  0xc3   :  { %v330_v43 = vsub.f32 1.0, %v329_v35  ;;  %v360_v31 = vor.u32 1.1754944e-38, %v359_v14 }
  0xc4   :  { %v312_v49 = vmul.f32 %v1463_v29, %v311_v40  ;;  %vm358_vm11 = vcmp.eq.f32.partialorder %v357_v27, 8.507059e+37 }
  0xc5   :  { %v331_v51 = vmul.f32 %v1465_v30, %v330_v43 }
  0xc6   :  { %v313_v56 = vadd.f32 %v1463_v29, %v312_v49 }
  0xc7   :  { %v1467_v55 = vpop.eup %1466  ;;  %v332_v62 = vadd.f32 %v1465_v30, %v331_v51 }
  0xc8   :  { %v1469_v59 = vpop.eup %1468  ;;  %v349_v60 = vmul.f32 %v1467_v55, %v347_v26  ;;  %v317_v0 = vsel %vm316_vm4, %v1463_v29, %v313_v56  ;;  %vm354_vm8 = vweird.f32 %v1467_v55  ;;  %v369_v26 = vld [vmem:[#allocation4 + $0x20] sm:$0xff]  ;;  %v372_v56 = vld [vmem:[#allocation4 + $0x38] sm:$0xff] }
  0xc9   :  { %v322_v5 = vsel %vm319_vm5, %v321_v61, %v317_v0  ;;  %v336_v10 = vsel %vm335_vm6, %v1465_v30, %v332_v62  ;;  %vm355_vm10 = vmor %vm353_vm9, %vm354_vm8 }
  0xca   :  { %v350_v4 = vsub.f32 1.0, %v349_v60  ;;  %v341_v11 = vsel %vm338_vm7, %v340_v63, %v336_v10  ;;  %v364_v15 = vmul.f32 %v1469_v59, %v322_v5 }
  0xcb   :  { %v363_v18 = vmul.f32 0.0, %v341_v11 }
  0xcc   :  { %v351_v22 = vmul.f32 %v1467_v55, %v350_v4 }
  0xcd   :  { %v1851_v23 = vadd.f32 %v364_v15, %v363_v18 }
  0xce   :  { %v352_v13 = vadd.f32 %v1467_v55, %v351_v22  ;;  %v371_v22 = vld [vmem:[#allocation4 + $0x30] sm:$0xff] }
  0xcf   :  { %1470 = vtanh.f32 %v1851_v23 }
  0xd0   :  { %v356_v29 = vsel %vm355_vm10, %v1467_v55, %v352_v13 }
  0xd1   :  { %v361_v30 = vsel %vm358_vm11, %v360_v31, %v356_v29 }
  0xd5   :  { %v1471_v35 = vpop.eup %1470 }
  0xd6   :  { %v367_v40 = vmul.f32 %v1471_v35, %v361_v30 }
  0xd8   :  { %v373_v43 = vpack.c.bf16 %v367_v40, %v367_v40 }
  0xda   :  { %382 = vmatmul.bf16.vlgmr.msrb.gmra.mxu0 %v373_v43  ;;  %395 = vmatmul.bf16.vlgmr.msrb.gmra.mxu1 %v373_v43 }
  0xdb   :  { %408 = vmatmul.bf16.vlgmr.msrb.gmra.mxu2 %v373_v43  ;;  %421 = vmatmul.bf16.vlgmr.msrb.gmra.mxu3 %v373_v43 }
  0xdc   :  { %624 = vmatpush.bf16.msrb.mxu0 %v1691_v3  ;;  %637 = vmatpush.bf16.msrb.mxu1 %v1693_v7 }
  0xdd   :  { %650 = vmatpush.bf16.msrb.mxu2 %v1706_v21  ;;  %663 = vmatpush.bf16.msrb.mxu3 %v1695_v8 }
  0xe0   :  { %625 = vmatpush.bf16.msrb.mxu0 %v1698_v12  ;;  %638 = vmatpush.bf16.msrb.mxu1 %v1702_v16 }
  0xe1   :  { %651 = vmatpush.bf16.msrb.mxu2 %v1718_v34  ;;  %664 = vmatpush.bf16.msrb.mxu3 %v1704_v17 }
  0xe4   :  { %626 = vmatpush.bf16.msrb.mxu0 %v1710_v28  ;;  %639 = vmatpush.bf16.msrb.mxu1 %v1714_v32 }
  0xe5   :  { %652 = vmatpush.bf16.msrb.mxu2 %v1724_v42  ;;  %665 = vmatpush.bf16.msrb.mxu3 %v1716_v33 }
  0xe8   :  { %627 = vmatpush.bf16.msrb.mxu0 %v1722_v41  ;;  %640 = vmatpush.bf16.msrb.mxu1 %v1728_v45 }
  0xe9   :  { %653 = vmatpush.bf16.msrb.mxu2 %v1736_v54  ;;  %666 = vmatpush.bf16.msrb.mxu3 %v1730_v46 }
  0xec   :  { %628 = vmatpush.bf16.msrb.mxu0 %v1734_v53  ;;  %641 = vmatpush.bf16.msrb.mxu1 %v1740_v57 }
  0xed   :  { %654 = vmatpush.bf16.msrb.mxu2 %v1748_v2  ;;  %667 = vmatpush.bf16.msrb.mxu3 %v1742_v58 }
  0xf0   :  { %629 = vmatpush.bf16.msrb.mxu0 %v1746_v1  ;;  %642 = vmatpush.bf16.msrb.mxu1 %v1752_v6 }
  0xf1   :  { %655 = vmatpush.bf16.msrb.mxu2 %v1760_v20  ;;  %668 = vmatpush.bf16.msrb.mxu3 %v1754_v9 }
  0xf4   :  { %630 = vmatpush.bf16.msrb.mxu0 %v1758_v19  ;;  %643 = vmatpush.bf16.msrb.mxu1 %v1764_v24 }
  0xf5   :  { %656 = vmatpush.bf16.msrb.mxu2 %v1772_v37  ;;  %669 = vmatpush.bf16.msrb.mxu3 %v1766_v25 }
  0xf8   :  { %631 = vmatpush.bf16.msrb.mxu0 %v1770_v36  ;;  %644 = vmatpush.bf16.msrb.mxu1 %v1776_v38 }
  0xf9   :  { %657 = vmatpush.bf16.msrb.mxu2 %v1784_v44  ;;  %670 = vmatpush.bf16.msrb.mxu3 %v1778_v39 }
 0x157   :  { %v383_v48 = vpop.f32.mrf.mxu0  ;;  %v396_v49 = vpop.f32.mrf.mxu1 }
 0x158   :  { %v426_v50 = vadd.f32 %v383_v48, %v369_v26  ;;  %v427_v51 = vadd.f32 %v396_v49, %v370_v47 }
 0x15a   :  { %v1395_v52 = vmul.f32 -1.442695, %v426_v50  ;;  %v1396_v55 = vmul.f32 -1.442695, %v427_v51 }
 0x15c   :  { %1472 = vpow2.f32 %v1395_v52 }
 0x15d   :  { %1474 = vpow2.f32 %v1396_v55 }
 0x15e   :  { %v409_v59 = vpop.f32.mrf.mxu2  ;;  %v422_v60 = vpop.f32.mrf.mxu3 }
 0x15f   :  { %v429_v61 = vadd.f32 %v422_v60, %v372_v56  ;;  %v385_v62 = vpop.f32.mrf.mxu0  ;;  %v398_v63 = vpop.f32.mrf.mxu1  ;;  %v428_v29 = vadd.f32 %v409_v59, %v371_v22 }
 0x161   :  { %v1397_v0 = vmul.f32 -1.442695, %v429_v61 }
 0x162   :  { %v1473_v4 = vpop.eup %1472 }
 0x163   :  { %v1475_v5 = vpop.eup %1474  ;;  %v433_v10 = vadd.f32 1.0, %v1473_v4  ;;  %1476 = vpow2.f32 %v1397_v0 }
 0x164   :  { %v452_v11 = vadd.f32 1.0, %v1475_v5 }
 0x165   :  { %1478 = vrcp.f32 %v433_v10  ;;  %v445_v26 = vand.u32 2147483648, %v433_v10  ;;  %v443_v49 = vand.u32 2147483647, %v433_v10  ;;  %vm439_vm14 = vweird.f32 %v433_v10 }
 0x166   :  { %1480 = vrcp.f32 %v452_v11  ;;  %v411_v15 = vpop.f32.mrf.mxu2  ;;  %v424_v18 = vpop.f32.mrf.mxu3  ;;  %v464_v47 = vand.u32 2147483648, %v452_v11  ;;  %v462_v51 = vand.u32 2147483647, %v452_v11  ;;  %vm458_vm15 = vweird.f32 %v452_v11 }
 0x167   :  { %v446_v56 = vor.u32 1.1754944e-38, %v445_v26  ;;  %vm444_vm2 = vcmp.eq.f32.partialorder %v443_v49, 8.507059e+37 }
 0x168   :  { %v465_v61 = vor.u32 1.1754944e-38, %v464_v47  ;;  %vm463_vm3 = vcmp.eq.f32.partialorder %v462_v51, 8.507059e+37 }
 0x169   :  { %v1477_v13 = vpop.eup %1476 }
 0x16a   :  { %v472_v14 = vadd.f32 1.0, %v1477_v13 }
 0x16b   :  { %v1479_v27 = vpop.eup %1478 }
 0x16c   :  { %v1481_v31 = vpop.eup %1480  ;;  %v435_v35 = vmul.f32 %v1479_v27, %v433_v10  ;;  %1482 = vrcp.f32 %v472_v14  ;;  %vm440_vm12 = vweird.f32 %v1479_v27  ;;  %vm478_vm5 = vweird.f32 %v472_v14 }
 0x16d   :  { %v454_v30 = vmul.f32 %v1481_v31, %v452_v11  ;;  %1484 = vtanh.f32 %v428_v29  ;;  %vm459_vm13 = vweird.f32 %v1481_v31  ;;  %vm441_vm0 = vmor %vm439_vm14, %vm440_vm12  ;;  %v484_v29 = vand.u32 2147483648, %v472_v14 }
 0x16e   :  { %v436_v40 = vsub.f32 1.0, %v435_v35  ;;  %vm460_vm1 = vmor %vm458_vm15, %vm459_vm13 }
 0x16f   :  { %v455_v43 = vsub.f32 1.0, %v454_v30  ;;  %v485_v30 = vor.u32 1.1754944e-38, %v484_v29 }
 0x170   :  { %v437_v48 = vmul.f32 %v1479_v27, %v436_v40 }
 0x171   :  { %v456_v50 = vmul.f32 %v1481_v31, %v455_v43 }
 0x172   :  { %v1483_v52 = vpop.eup %1482  ;;  %v438_v55 = vadd.f32 %v1479_v27, %v437_v48 }
 0x173   :  { %v457_v59 = vadd.f32 %v1481_v31, %v456_v50  ;;  %v474_v60 = vmul.f32 %v1483_v52, %v472_v14  ;;  %v1485_v63 = vpop.eup %1484  ;;  %vm479_vm4 = vweird.f32 %v1483_v52 }
 0x174   :  { %v442_v62 = vsel %vm441_vm0, %v1479_v27, %v438_v55  ;;  %v482_v27 = vand.u32 2147483647, %v472_v14  ;;  %vm480_vm6 = vmor %vm478_vm5, %vm479_vm4  ;;  %v495_v14 = vld [vmem:[#allocation4 + $0x48] sm:$0xff]  ;;  %v497_v55 = vld [vmem:[#allocation4 + $0x58] sm:$0xff] }
 0x175   :  { %v447_v0 = vsel %vm444_vm2, %v446_v56, %v442_v62  ;;  %v461_v4 = vsel %vm460_vm1, %v1481_v31, %v457_v59  ;;  %v475_v5 = vsub.f32 1.0, %v474_v60 }
 0x176   :  { %v466_v15 = vsel %vm463_vm3, %v465_v61, %v461_v4  ;;  %v489_v18 = vmul.f32 %v1485_v63, %v447_v0  ;;  %vm483_vm7 = vcmp.eq.f32.partialorder %v482_v27, 8.507059e+37 }
 0x177   :  { %v488_v22 = vmul.f32 %v466_v15, %v1851_v23  ;;  %v476_v13 = vmul.f32 %v1483_v52, %v475_v5  ;;  %v494_v23 = vld [vmem:[#allocation4 + $0x40] sm:$0xff] }
 0x179   :  { %v1887_v10 = vadd.f32 %v489_v18, %v488_v22  ;;  %v477_v11 = vadd.f32 %v1483_v52, %v476_v13  ;;  %v496_v13 = vld [vmem:[#allocation4 + $0x50] sm:$0xff] }
 0x17b   :  { %1486 = vtanh.f32 %v1887_v10  ;;  %v481_v35 = vsel %vm480_vm6, %v1483_v52, %v477_v11 }
 0x17c   :  { %v486_v40 = vsel %vm483_vm7, %v485_v30, %v481_v35 }
 0x181   :  { %v1487_v31 = vpop.eup %1486 }
 0x182   :  { %v492_v43 = vmul.f32 %v1487_v31, %v486_v40 }
 0x184   :  { %v498_v26 = vpack.c.bf16 %v492_v43, %v492_v43 }
 0x186   :  { %507 = vmatmul.bf16.vlgmr.msra.gmra.mxu0 %v498_v26  ;;  %520 = vmatmul.bf16.vlgmr.msra.gmra.mxu1 %v498_v26 }
 0x187   :  { %533 = vmatmul.bf16.vlgmr.msra.gmra.mxu2 %v498_v26  ;;  %546 = vmatmul.bf16.vlgmr.msra.gmra.mxu3 %v498_v26 }
 0x188   :  { %749 = vmatpush.bf16.msra.mxu0 %v1691_v3  ;;  %762 = vmatpush.bf16.msra.mxu1 %v1693_v7 }
 0x189   :  { %775 = vmatpush.bf16.msra.mxu2 %v1706_v21  ;;  %788 = vmatpush.bf16.msra.mxu3 %v1695_v8 }
 0x18c   :  { %750 = vmatpush.bf16.msra.mxu0 %v1698_v12  ;;  %763 = vmatpush.bf16.msra.mxu1 %v1702_v16 }
 0x18d   :  { %776 = vmatpush.bf16.msra.mxu2 %v1718_v34  ;;  %789 = vmatpush.bf16.msra.mxu3 %v1704_v17 }
 0x190   :  { %751 = vmatpush.bf16.msra.mxu0 %v1710_v28  ;;  %764 = vmatpush.bf16.msra.mxu1 %v1714_v32 }
 0x191   :  { %777 = vmatpush.bf16.msra.mxu2 %v1724_v42  ;;  %790 = vmatpush.bf16.msra.mxu3 %v1716_v33 }
 0x194   :  { %752 = vmatpush.bf16.msra.mxu0 %v1722_v41  ;;  %765 = vmatpush.bf16.msra.mxu1 %v1728_v45 }
 0x195   :  { %778 = vmatpush.bf16.msra.mxu2 %v1736_v54  ;;  %791 = vmatpush.bf16.msra.mxu3 %v1730_v46 }
 0x198   :  { %753 = vmatpush.bf16.msra.mxu0 %v1734_v53  ;;  %766 = vmatpush.bf16.msra.mxu1 %v1740_v57 }
 0x199   :  { %779 = vmatpush.bf16.msra.mxu2 %v1748_v2  ;;  %792 = vmatpush.bf16.msra.mxu3 %v1742_v58 }
 0x19c   :  { %754 = vmatpush.bf16.msra.mxu0 %v1746_v1  ;;  %767 = vmatpush.bf16.msra.mxu1 %v1752_v6 }
 0x19d   :  { %780 = vmatpush.bf16.msra.mxu2 %v1760_v20  ;;  %793 = vmatpush.bf16.msra.mxu3 %v1754_v9 }
 0x1a0   :  { %755 = vmatpush.bf16.msra.mxu0 %v1758_v19  ;;  %768 = vmatpush.bf16.msra.mxu1 %v1764_v24 }
 0x1a1   :  { %781 = vmatpush.bf16.msra.mxu2 %v1772_v37  ;;  %794 = vmatpush.bf16.msra.mxu3 %v1766_v25 }
 0x1a4   :  { %756 = vmatpush.bf16.msra.mxu0 %v1770_v36  ;;  %769 = vmatpush.bf16.msra.mxu1 %v1776_v38 }
 0x1a5   :  { %782 = vmatpush.bf16.msra.mxu2 %v1784_v44  ;;  %795 = vmatpush.bf16.msra.mxu3 %v1778_v39 }
 0x203   :  { %v508_v47 = vpop.f32.mrf.mxu0  ;;  %v521_v48 = vpop.f32.mrf.mxu1 }
 0x204   :  { %v551_v49 = vadd.f32 %v508_v47, %v494_v23  ;;  %v552_v50 = vadd.f32 %v521_v48, %v495_v14 }
 0x206   :  { %v1398_v51 = vmul.f32 -1.442695, %v551_v49  ;;  %v1399_v52 = vmul.f32 -1.442695, %v552_v50 }
 0x208   :  { %1488 = vpow2.f32 %v1398_v51 }
 0x209   :  { %1490 = vpow2.f32 %v1399_v52 }
 0x20a   :  { %v534_v56 = vpop.f32.mrf.mxu2  ;;  %v547_v59 = vpop.f32.mrf.mxu3 }
 0x20b   :  { %v554_v60 = vadd.f32 %v547_v59, %v497_v55  ;;  %v510_v61 = vpop.f32.mrf.mxu0  ;;  %v523_v62 = vpop.f32.mrf.mxu1  ;;  %v553_v35 = vadd.f32 %v534_v56, %v496_v13 }
 0x20d   :  { %v1400_v63 = vmul.f32 -1.442695, %v554_v60 }
 0x20e   :  { %v1489_v0 = vpop.eup %1488 }
 0x20f   :  { %v1491_v4 = vpop.eup %1490  ;;  %v558_v5 = vadd.f32 1.0, %v1489_v0  ;;  %1492 = vpow2.f32 %v1400_v63 }
 0x210   :  { %v577_v15 = vadd.f32 1.0, %v1491_v4 }
 0x211   :  { %1494 = vrcp.f32 %v558_v5  ;;  %v570_v23 = vand.u32 2147483648, %v558_v5  ;;  %v568_v48 = vand.u32 2147483647, %v558_v5  ;;  %vm564_vm10 = vweird.f32 %v558_v5 }
 0x212   :  { %1496 = vrcp.f32 %v577_v15  ;;  %v536_v18 = vpop.f32.mrf.mxu2  ;;  %v549_v22 = vpop.f32.mrf.mxu3  ;;  %v589_v14 = vand.u32 2147483648, %v577_v15  ;;  %v587_v50 = vand.u32 2147483647, %v577_v15  ;;  %vm583_vm11 = vweird.f32 %v577_v15 }
 0x213   :  { %v571_v55 = vor.u32 1.1754944e-38, %v570_v23  ;;  %vm569_vm14 = vcmp.eq.f32.partialorder %v568_v48, 8.507059e+37 }
 0x214   :  { %v590_v60 = vor.u32 1.1754944e-38, %v589_v14  ;;  %vm588_vm15 = vcmp.eq.f32.partialorder %v587_v50, 8.507059e+37 }
 0x215   :  { %v1493_v11 = vpop.eup %1492 }
 0x216   :  { %v597_v29 = vadd.f32 1.0, %v1493_v11 }
 0x217   :  { %v1495_v27 = vpop.eup %1494 }
 0x218   :  { %v1497_v30 = vpop.eup %1496  ;;  %v560_v31 = vmul.f32 %v1495_v27, %v558_v5  ;;  %1498 = vrcp.f32 %v597_v29  ;;  %vm565_vm8 = vweird.f32 %v1495_v27  ;;  %vm603_vm1 = vweird.f32 %v597_v29 }
 0x219   :  { %v579_v40 = vmul.f32 %v1497_v30, %v577_v15  ;;  %1500 = vtanh.f32 %v553_v35  ;;  %vm584_vm9 = vweird.f32 %v1497_v30  ;;  %vm566_vm12 = vmor %vm564_vm10, %vm565_vm8  ;;  %v609_v35 = vand.u32 2147483648, %v597_v29 }
 0x21a   :  { %v561_v43 = vsub.f32 1.0, %v560_v31  ;;  %vm585_vm13 = vmor %vm583_vm11, %vm584_vm9 }
 0x21b   :  { %v580_v26 = vsub.f32 1.0, %v579_v40  ;;  %v610_v40 = vor.u32 1.1754944e-38, %v609_v35 }
 0x21c   :  { %v562_v47 = vmul.f32 %v1495_v27, %v561_v43 }
 0x21d   :  { %v581_v49 = vmul.f32 %v1497_v30, %v580_v26 }
 0x21e   :  { %v1499_v51 = vpop.eup %1498  ;;  %v563_v52 = vadd.f32 %v1495_v27, %v562_v47 }
 0x21f   :  { %v582_v56 = vadd.f32 %v1497_v30, %v581_v49  ;;  %v599_v59 = vmul.f32 %v1499_v51, %v597_v29  ;;  %v1501_v62 = vpop.eup %1500  ;;  %vm604_vm0 = vweird.f32 %v1499_v51 }
 0x220   :  { %v567_v61 = vsel %vm566_vm12, %v1495_v27, %v563_v52  ;;  %v607_v27 = vand.u32 2147483647, %v597_v29  ;;  %vm605_vm2 = vmor %vm603_vm1, %vm604_vm0  ;;  %v620_v29 = vld [vmem:[#allocation4 + $0x68] sm:$0xff]  ;;  %v622_v52 = vld [vmem:[#allocation4 + $0x78] sm:$0xff] }
 0x221   :  { %v572_v63 = vsel %vm569_vm14, %v571_v55, %v567_v61  ;;  %v586_v0 = vsel %vm585_vm13, %v1497_v30, %v582_v56  ;;  %v600_v4 = vsub.f32 1.0, %v599_v59 }
 0x222   :  { %v591_v18 = vsel %vm588_vm15, %v590_v60, %v586_v0  ;;  %v614_v22 = vmul.f32 %v1501_v62, %v572_v63  ;;  %vm608_vm3 = vcmp.eq.f32.partialorder %v607_v27, 8.507059e+37 }
 0x223   :  { %v613_v13 = vmul.f32 %v591_v18, %v1887_v10  ;;  %v601_v11 = vmul.f32 %v1499_v51, %v600_v4  ;;  %v619_v10 = vld [vmem:[#allocation4 + $0x60] sm:$0xff] }
 0x225   :  { %v1923_v5 = vadd.f32 %v614_v22, %v613_v13  ;;  %v602_v15 = vadd.f32 %v1499_v51, %v601_v11  ;;  %v621_v11 = vld [vmem:[#allocation4 + $0x70] sm:$0xff] }
 0x227   :  { %1502 = vtanh.f32 %v1923_v5  ;;  %v606_v31 = vsel %vm605_vm2, %v1499_v51, %v602_v15 }
 0x228   :  { %v611_v43 = vsel %vm608_vm3, %v610_v40, %v606_v31 }
 0x22d   :  { %v1503_v30 = vpop.eup %1502 }
 0x22e   :  { %v617_v26 = vmul.f32 %v1503_v30, %v611_v43 }
 0x230   :  { %v623_v23 = vpack.c.bf16 %v617_v26, %v617_v26 }
 0x232   :  { %632 = vmatmul.bf16.vlgmr.msrb.gmra.mxu0 %v623_v23  ;;  %645 = vmatmul.bf16.vlgmr.msrb.gmra.mxu1 %v623_v23 }
 0x233   :  { %658 = vmatmul.bf16.vlgmr.msrb.gmra.mxu2 %v623_v23  ;;  %671 = vmatmul.bf16.vlgmr.msrb.gmra.mxu3 %v623_v23 }
 0x234   :  { %874 = vmatpush.bf16.msrb.mxu0 %v1691_v3  ;;  %887 = vmatpush.bf16.msrb.mxu1 %v1693_v7 }
 0x235   :  { %900 = vmatpush.bf16.msrb.mxu2 %v1706_v21  ;;  %913 = vmatpush.bf16.msrb.mxu3 %v1695_v8 }
 0x238   :  { %875 = vmatpush.bf16.msrb.mxu0 %v1698_v12  ;;  %888 = vmatpush.bf16.msrb.mxu1 %v1702_v16 }
 0x239   :  { %901 = vmatpush.bf16.msrb.mxu2 %v1718_v34  ;;  %914 = vmatpush.bf16.msrb.mxu3 %v1704_v17 }
 0x23c   :  { %876 = vmatpush.bf16.msrb.mxu0 %v1710_v28  ;;  %889 = vmatpush.bf16.msrb.mxu1 %v1714_v32 }
 0x23d   :  { %902 = vmatpush.bf16.msrb.mxu2 %v1724_v42  ;;  %915 = vmatpush.bf16.msrb.mxu3 %v1716_v33 }
 0x240   :  { %877 = vmatpush.bf16.msrb.mxu0 %v1722_v41  ;;  %890 = vmatpush.bf16.msrb.mxu1 %v1728_v45 }
 0x241   :  { %903 = vmatpush.bf16.msrb.mxu2 %v1736_v54  ;;  %916 = vmatpush.bf16.msrb.mxu3 %v1730_v46 }
 0x244   :  { %878 = vmatpush.bf16.msrb.mxu0 %v1734_v53  ;;  %891 = vmatpush.bf16.msrb.mxu1 %v1740_v57 }
 0x245   :  { %904 = vmatpush.bf16.msrb.mxu2 %v1748_v2  ;;  %917 = vmatpush.bf16.msrb.mxu3 %v1742_v58 }
 0x248   :  { %879 = vmatpush.bf16.msrb.mxu0 %v1746_v1  ;;  %892 = vmatpush.bf16.msrb.mxu1 %v1752_v6 }
 0x249   :  { %905 = vmatpush.bf16.msrb.mxu2 %v1760_v20  ;;  %918 = vmatpush.bf16.msrb.mxu3 %v1754_v9 }
 0x24c   :  { %880 = vmatpush.bf16.msrb.mxu0 %v1758_v19  ;;  %893 = vmatpush.bf16.msrb.mxu1 %v1764_v24 }
 0x24d   :  { %906 = vmatpush.bf16.msrb.mxu2 %v1772_v37  ;;  %919 = vmatpush.bf16.msrb.mxu3 %v1766_v25 }
 0x250   :  { %881 = vmatpush.bf16.msrb.mxu0 %v1770_v36  ;;  %894 = vmatpush.bf16.msrb.mxu1 %v1776_v38 }
 0x251   :  { %907 = vmatpush.bf16.msrb.mxu2 %v1784_v44  ;;  %920 = vmatpush.bf16.msrb.mxu3 %v1778_v39 }
 0x2af   :  { %v633_v14 = vpop.f32.mrf.mxu0  ;;  %v646_v47 = vpop.f32.mrf.mxu1 }
 0x2b0   :  { %v676_v48 = vadd.f32 %v633_v14, %v619_v10  ;;  %v677_v49 = vadd.f32 %v646_v47, %v620_v29 }
 0x2b2   :  { %v1401_v50 = vmul.f32 -1.442695, %v676_v48  ;;  %v1402_v51 = vmul.f32 -1.442695, %v677_v49 }
 0x2b4   :  { %1504 = vpow2.f32 %v1401_v50 }
 0x2b5   :  { %1506 = vpow2.f32 %v1402_v51 }
 0x2b6   :  { %v659_v55 = vpop.f32.mrf.mxu2  ;;  %v672_v56 = vpop.f32.mrf.mxu3 }
 0x2b7   :  { %v679_v59 = vadd.f32 %v672_v56, %v622_v52  ;;  %v635_v60 = vpop.f32.mrf.mxu0  ;;  %v648_v61 = vpop.f32.mrf.mxu1  ;;  %v678_v31 = vadd.f32 %v659_v55, %v621_v11 }
 0x2b9   :  { %v1403_v62 = vmul.f32 -1.442695, %v679_v59 }
 0x2ba   :  { %v1505_v63 = vpop.eup %1504 }
 0x2bb   :  { %v1507_v0 = vpop.eup %1506  ;;  %v683_v4 = vadd.f32 1.0, %v1505_v63  ;;  %1508 = vpow2.f32 %v1403_v62 }
 0x2bc   :  { %v702_v18 = vadd.f32 1.0, %v1507_v0 }
 0x2bd   :  { %1510 = vrcp.f32 %v683_v4  ;;  %v695_v10 = vand.u32 2147483648, %v683_v4  ;;  %v693_v47 = vand.u32 2147483647, %v683_v4  ;;  %vm689_vm6 = vweird.f32 %v683_v4 }
 0x2be   :  { %1512 = vrcp.f32 %v702_v18  ;;  %v661_v22 = vpop.f32.mrf.mxu2  ;;  %v674_v13 = vpop.f32.mrf.mxu3  ;;  %v714_v29 = vand.u32 2147483648, %v702_v18  ;;  %v712_v49 = vand.u32 2147483647, %v702_v18  ;;  %vm708_vm7 = vweird.f32 %v702_v18 }
 0x2bf   :  { %v696_v52 = vor.u32 1.1754944e-38, %v695_v10  ;;  %vm694_vm10 = vcmp.eq.f32.partialorder %v693_v47, 8.507059e+37 }
 0x2c0   :  { %v715_v59 = vor.u32 1.1754944e-38, %v714_v29  ;;  %vm713_vm11 = vcmp.eq.f32.partialorder %v712_v49, 8.507059e+37 }
 0x2c1   :  { %v1509_v15 = vpop.eup %1508 }
 0x2c2   :  { %v722_v35 = vadd.f32 1.0, %v1509_v15 }
 0x2c3   :  { %v1511_v27 = vpop.eup %1510 }
 0x2c4   :  { %v1513_v40 = vpop.eup %1512  ;;  %v685_v30 = vmul.f32 %v1511_v27, %v683_v4  ;;  %1514 = vrcp.f32 %v722_v35  ;;  %vm690_vm4 = vweird.f32 %v1511_v27  ;;  %vm728_vm13 = vweird.f32 %v722_v35 }
 0x2c5   :  { %v704_v43 = vmul.f32 %v1513_v40, %v702_v18  ;;  %1516 = vtanh.f32 %v678_v31  ;;  %vm709_vm5 = vweird.f32 %v1513_v40  ;;  %vm691_vm8 = vmor %vm689_vm6, %vm690_vm4  ;;  %v734_v31 = vand.u32 2147483648, %v722_v35 }
 0x2c6   :  { %v686_v26 = vsub.f32 1.0, %v685_v30  ;;  %vm710_vm9 = vmor %vm708_vm7, %vm709_vm5 }
 0x2c7   :  { %v705_v23 = vsub.f32 1.0, %v704_v43  ;;  %v735_v43 = vor.u32 1.1754944e-38, %v734_v31 }
 0x2c8   :  { %v687_v14 = vmul.f32 %v1511_v27, %v686_v26 }
 0x2c9   :  { %v706_v48 = vmul.f32 %v1513_v40, %v705_v23 }
 0x2ca   :  { %v1515_v50 = vpop.eup %1514  ;;  %v688_v51 = vadd.f32 %v1511_v27, %v687_v14 }
 0x2cb   :  { %v707_v55 = vadd.f32 %v1513_v40, %v706_v48  ;;  %v724_v56 = vmul.f32 %v1515_v50, %v722_v35  ;;  %v1517_v61 = vpop.eup %1516  ;;  %vm729_vm12 = vweird.f32 %v1515_v50 }
 0x2cc   :  { %v692_v60 = vsel %vm691_vm8, %v1511_v27, %v688_v51  ;;  %v732_v27 = vand.u32 2147483647, %v722_v35  ;;  %vm730_vm14 = vmor %vm728_vm13, %vm729_vm12  ;;  %v745_v35 = vld [vmem:[#allocation4 + $0x88] sm:$0xff]  ;;  %v747_v51 = vld [vmem:[#allocation4 + $0x98] sm:$0xff] }
 0x2cd   :  { %v697_v62 = vsel %vm694_vm10, %v696_v52, %v692_v60  ;;  %v711_v63 = vsel %vm710_vm9, %v1513_v40, %v707_v55  ;;  %v725_v0 = vsub.f32 1.0, %v724_v56 }
 0x2ce   :  { %v716_v22 = vsel %vm713_vm11, %v715_v59, %v711_v63  ;;  %v739_v13 = vmul.f32 %v1517_v61, %v697_v62  ;;  %vm733_vm15 = vcmp.eq.f32.partialorder %v732_v27, 8.507059e+37 }
 0x2cf   :  { %v738_v11 = vmul.f32 %v716_v22, %v1923_v5  ;;  %v726_v15 = vmul.f32 %v1515_v50, %v725_v0  ;;  %v744_v5 = vld [vmem:[#allocation4 + $0x80] sm:$0xff] }
 0x2d1   :  { %v1959_v4 = vadd.f32 %v739_v13, %v738_v11  ;;  %v727_v18 = vadd.f32 %v1515_v50, %v726_v15  ;;  %v746_v15 = vld [vmem:[#allocation4 + $0x90] sm:$0xff] }
 0x2d3   :  { %1518 = vtanh.f32 %v1959_v4  ;;  %v731_v30 = vsel %vm730_vm14, %v1515_v50, %v727_v18 }
 0x2d4   :  { %v736_v26 = vsel %vm733_vm15, %v735_v43, %v731_v30 }
 0x2d9   :  { %v1519_v40 = vpop.eup %1518 }
 0x2da   :  { %v742_v23 = vmul.f32 %v1519_v40, %v736_v26 }
 0x2dc   :  { %v748_v10 = vpack.c.bf16 %v742_v23, %v742_v23 }
 0x2de   :  { %757 = vmatmul.bf16.vlgmr.msra.gmra.mxu0 %v748_v10  ;;  %770 = vmatmul.bf16.vlgmr.msra.gmra.mxu1 %v748_v10 }
 0x2df   :  { %783 = vmatmul.bf16.vlgmr.msra.gmra.mxu2 %v748_v10  ;;  %796 = vmatmul.bf16.vlgmr.msra.gmra.mxu3 %v748_v10 }
 0x2e0   :  { %999 = vmatpush.bf16.msra.mxu0 %v1691_v3  ;;  %1012 = vmatpush.bf16.msra.mxu1 %v1693_v7 }
 0x2e1   :  { %1025 = vmatpush.bf16.msra.mxu2 %v1706_v21  ;;  %1038 = vmatpush.bf16.msra.mxu3 %v1695_v8 }
 0x2e4   :  { %1000 = vmatpush.bf16.msra.mxu0 %v1698_v12  ;;  %1013 = vmatpush.bf16.msra.mxu1 %v1702_v16 }
 0x2e5   :  { %1026 = vmatpush.bf16.msra.mxu2 %v1718_v34  ;;  %1039 = vmatpush.bf16.msra.mxu3 %v1704_v17 }
 0x2e8   :  { %1001 = vmatpush.bf16.msra.mxu0 %v1710_v28  ;;  %1014 = vmatpush.bf16.msra.mxu1 %v1714_v32 }
 0x2e9   :  { %1027 = vmatpush.bf16.msra.mxu2 %v1724_v42  ;;  %1040 = vmatpush.bf16.msra.mxu3 %v1716_v33 }
 0x2ec   :  { %1002 = vmatpush.bf16.msra.mxu0 %v1722_v41  ;;  %1015 = vmatpush.bf16.msra.mxu1 %v1728_v45 }
 0x2ed   :  { %1028 = vmatpush.bf16.msra.mxu2 %v1736_v54  ;;  %1041 = vmatpush.bf16.msra.mxu3 %v1730_v46 }
 0x2f0   :  { %1003 = vmatpush.bf16.msra.mxu0 %v1734_v53  ;;  %1016 = vmatpush.bf16.msra.mxu1 %v1740_v57 }
 0x2f1   :  { %1029 = vmatpush.bf16.msra.mxu2 %v1748_v2  ;;  %1042 = vmatpush.bf16.msra.mxu3 %v1742_v58 }
 0x2f4   :  { %1004 = vmatpush.bf16.msra.mxu0 %v1746_v1  ;;  %1017 = vmatpush.bf16.msra.mxu1 %v1752_v6 }
 0x2f5   :  { %1030 = vmatpush.bf16.msra.mxu2 %v1760_v20  ;;  %1043 = vmatpush.bf16.msra.mxu3 %v1754_v9 }
 0x2f8   :  { %1005 = vmatpush.bf16.msra.mxu0 %v1758_v19  ;;  %1018 = vmatpush.bf16.msra.mxu1 %v1764_v24 }
 0x2f9   :  { %1031 = vmatpush.bf16.msra.mxu2 %v1772_v37  ;;  %1044 = vmatpush.bf16.msra.mxu3 %v1766_v25 }
 0x2fc   :  { %1006 = vmatpush.bf16.msra.mxu0 %v1770_v36  ;;  %1019 = vmatpush.bf16.msra.mxu1 %v1776_v38 }
 0x2fd   :  { %1032 = vmatpush.bf16.msra.mxu2 %v1784_v44  ;;  %1045 = vmatpush.bf16.msra.mxu3 %v1778_v39 }
 0x35b   :  { %v758_v29 = vpop.f32.mrf.mxu0  ;;  %v771_v14 = vpop.f32.mrf.mxu1 }
 0x35c   :  { %v801_v47 = vadd.f32 %v758_v29, %v744_v5  ;;  %v802_v48 = vadd.f32 %v771_v14, %v745_v35 }
 0x35e   :  { %v1404_v49 = vmul.f32 -1.442695, %v801_v47  ;;  %v1405_v50 = vmul.f32 -1.442695, %v802_v48 }
 0x360   :  { %1520 = vpow2.f32 %v1404_v49 }
 0x361   :  { %1522 = vpow2.f32 %v1405_v50 }
 0x362   :  { %v784_v52 = vpop.f32.mrf.mxu2  ;;  %v797_v55 = vpop.f32.mrf.mxu3 }
 0x363   :  { %v804_v56 = vadd.f32 %v797_v55, %v747_v51  ;;  %v760_v59 = vpop.f32.mrf.mxu0  ;;  %v773_v60 = vpop.f32.mrf.mxu1  ;;  %v803_v30 = vadd.f32 %v784_v52, %v746_v15 }
 0x365   :  { %v1406_v61 = vmul.f32 -1.442695, %v804_v56 }
 0x366   :  { %v1521_v62 = vpop.eup %1520 }
 0x367   :  { %v1523_v63 = vpop.eup %1522  ;;  %v808_v0 = vadd.f32 1.0, %v1521_v62  ;;  %1524 = vpow2.f32 %v1406_v61 }
 0x368   :  { %v827_v22 = vadd.f32 1.0, %v1523_v63 }
 0x369   :  { %1526 = vrcp.f32 %v808_v0  ;;  %v820_v5 = vand.u32 2147483648, %v808_v0  ;;  %v818_v14 = vand.u32 2147483647, %v808_v0  ;;  %vm814_vm2 = vweird.f32 %v808_v0 }
 0x36a   :  { %1528 = vrcp.f32 %v827_v22  ;;  %v786_v13 = vpop.f32.mrf.mxu2  ;;  %v799_v11 = vpop.f32.mrf.mxu3  ;;  %v839_v35 = vand.u32 2147483648, %v827_v22  ;;  %v837_v48 = vand.u32 2147483647, %v827_v22  ;;  %vm833_vm3 = vweird.f32 %v827_v22 }
 0x36b   :  { %v821_v51 = vor.u32 1.1754944e-38, %v820_v5  ;;  %vm819_vm6 = vcmp.eq.f32.partialorder %v818_v14, 8.507059e+37 }
 0x36c   :  { %v840_v56 = vor.u32 1.1754944e-38, %v839_v35  ;;  %vm838_vm7 = vcmp.eq.f32.partialorder %v837_v48, 8.507059e+37 }
 0x36d   :  { %v1525_v18 = vpop.eup %1524 }
 0x36e   :  { %v847_v31 = vadd.f32 1.0, %v1525_v18 }
 0x36f   :  { %v1527_v27 = vpop.eup %1526 }
 0x370   :  { %v1529_v43 = vpop.eup %1528  ;;  %v810_v40 = vmul.f32 %v1527_v27, %v808_v0  ;;  %1530 = vrcp.f32 %v847_v31  ;;  %vm815_vm0 = vweird.f32 %v1527_v27  ;;  %vm853_vm9 = vweird.f32 %v847_v31 }
 0x371   :  { %v829_v26 = vmul.f32 %v1529_v43, %v827_v22  ;;  %1532 = vtanh.f32 %v803_v30  ;;  %vm834_vm1 = vweird.f32 %v1529_v43  ;;  %vm816_vm4 = vmor %vm814_vm2, %vm815_vm0  ;;  %v859_v30 = vand.u32 2147483648, %v847_v31 }
 0x372   :  { %v811_v23 = vsub.f32 1.0, %v810_v40  ;;  %vm835_vm5 = vmor %vm833_vm3, %vm834_vm1 }
 0x373   :  { %v830_v10 = vsub.f32 1.0, %v829_v26  ;;  %v860_v26 = vor.u32 1.1754944e-38, %v859_v30 }
 0x374   :  { %v812_v29 = vmul.f32 %v1527_v27, %v811_v23 }
 0x375   :  { %v831_v47 = vmul.f32 %v1529_v43, %v830_v10 }
 0x376   :  { %v1531_v49 = vpop.eup %1530  ;;  %v813_v50 = vadd.f32 %v1527_v27, %v812_v29 }
 0x377   :  { %v832_v52 = vadd.f32 %v1529_v43, %v831_v47  ;;  %v849_v55 = vmul.f32 %v1531_v49, %v847_v31  ;;  %v1533_v60 = vpop.eup %1532  ;;  %vm854_vm8 = vweird.f32 %v1531_v49 }
 0x378   :  { %v817_v59 = vsel %vm816_vm4, %v1527_v27, %v813_v50  ;;  %v857_v27 = vand.u32 2147483647, %v847_v31  ;;  %vm855_vm10 = vmor %vm853_vm9, %vm854_vm8 }
 0x379   :  { %v822_v61 = vsel %vm819_vm6, %v821_v51, %v817_v59  ;;  %v836_v62 = vsel %vm835_vm5, %v1529_v43, %v832_v52  ;;  %v850_v63 = vsub.f32 1.0, %v849_v55 }
 0x37a   :  { %v841_v13 = vsel %vm838_vm7, %v840_v56, %v836_v62  ;;  %v864_v11 = vmul.f32 %v1533_v60, %v822_v61  ;;  %vm858_vm11 = vcmp.eq.f32.partialorder %v857_v27, 8.507059e+37 }
 0x37b   :  { %v863_v15 = vmul.f32 %v841_v13, %v1959_v4  ;;  %v851_v18 = vmul.f32 %v1531_v49, %v850_v63 }
 0x37d   :  { %v1995_v0 = vadd.f32 %v864_v11, %v863_v15  ;;  %v852_v22 = vadd.f32 %v1531_v49, %v851_v18 }
 0x37f   :  { %1534 = vtanh.f32 %v1995_v0  ;;  %v856_v40 = vsel %vm855_vm10, %v1531_v49, %v852_v22 }
 0x380   :  { %v861_v23 = vsel %vm858_vm11, %v860_v26, %v856_v40 }
 0x385   :  { %v1535_v43 = vpop.eup %1534 }
 0x386   :  { %v867_v10 = vmul.f32 %v1535_v43, %v861_v23 }
 0x388   :  { %v873_v5 = vpack.c.bf16 %v867_v10, %v867_v10 }
 0x38a   :  { %882 = vmatmul.bf16.vlgmr.msrb.gmra.mxu0 %v873_v5  ;;  %895 = vmatmul.bf16.vlgmr.msrb.gmra.mxu1 %v873_v5 }
 0x38b   :  { %908 = vmatmul.bf16.vlgmr.msrb.gmra.mxu2 %v873_v5  ;;  %921 = vmatmul.bf16.vlgmr.msrb.gmra.mxu3 %v873_v5  ;;  %v995_v5 = vld [vmem:[#allocation4 + $0xc8] sm:$0xff] }
 0x38c   :  { %1124 = vmatpush.bf16.msrb.mxu0 %v1691_v3  ;;  %1137 = vmatpush.bf16.msrb.mxu1 %v1693_v7  ;;  %v869_v3 = vld [vmem:[#allocation4 + $0xa0] sm:$0xff]  ;;  %v870_v7 = vld [vmem:[#allocation4 + $0xa8] sm:$0xff] }
 0x38d   :  { %1150 = vmatpush.bf16.msrb.mxu2 %v1706_v21  ;;  %1163 = vmatpush.bf16.msrb.mxu3 %v1695_v8 }
 0x390   :  { %1125 = vmatpush.bf16.msrb.mxu0 %v1698_v12  ;;  %1138 = vmatpush.bf16.msrb.mxu1 %v1702_v16 }
 0x391   :  { %1151 = vmatpush.bf16.msrb.mxu2 %v1718_v34  ;;  %1164 = vmatpush.bf16.msrb.mxu3 %v1704_v17 }
 0x394   :  { %1126 = vmatpush.bf16.msrb.mxu0 %v1710_v28  ;;  %1139 = vmatpush.bf16.msrb.mxu1 %v1714_v32  ;;  %v872_v32 = vld [vmem:[#allocation4 + $0xb8] sm:$0xff] }
 0x395   :  { %1152 = vmatpush.bf16.msrb.mxu2 %v1724_v42  ;;  %1165 = vmatpush.bf16.msrb.mxu3 %v1716_v33 }
 0x398   :  { %1127 = vmatpush.bf16.msrb.mxu0 %v1722_v41  ;;  %1140 = vmatpush.bf16.msrb.mxu1 %v1728_v45 }
 0x399   :  { %1153 = vmatpush.bf16.msrb.mxu2 %v1736_v54  ;;  %1166 = vmatpush.bf16.msrb.mxu3 %v1730_v46 }
 0x39c   :  { %1128 = vmatpush.bf16.msrb.mxu0 %v1734_v53  ;;  %1141 = vmatpush.bf16.msrb.mxu1 %v1740_v57 }
 0x39d   :  { %1154 = vmatpush.bf16.msrb.mxu2 %v1748_v2  ;;  %1167 = vmatpush.bf16.msrb.mxu3 %v1742_v58 }
 0x3a0   :  { %1129 = vmatpush.bf16.msrb.mxu0 %v1746_v1  ;;  %1142 = vmatpush.bf16.msrb.mxu1 %v1752_v6  ;;  %v871_v6 = vld [vmem:[#allocation4 + $0xb0] sm:$0xff] }
 0x3a1   :  { %1155 = vmatpush.bf16.msrb.mxu2 %v1760_v20  ;;  %1168 = vmatpush.bf16.msrb.mxu3 %v1754_v9 }
 0x3a4   :  { %1130 = vmatpush.bf16.msrb.mxu0 %v1758_v19  ;;  %1143 = vmatpush.bf16.msrb.mxu1 %v1764_v24 }
 0x3a5   :  { %1156 = vmatpush.bf16.msrb.mxu2 %v1772_v37  ;;  %1169 = vmatpush.bf16.msrb.mxu3 %v1766_v25 }
 0x3a8   :  { %1131 = vmatpush.bf16.msrb.mxu0 %v1770_v36  ;;  %1144 = vmatpush.bf16.msrb.mxu1 %v1776_v38 }
 0x3a9   :  { %1157 = vmatpush.bf16.msrb.mxu2 %v1784_v44  ;;  %1170 = vmatpush.bf16.msrb.mxu3 %v1778_v39 }
 0x407   :  { %v883_v8 = vpop.f32.mrf.mxu0  ;;  %v896_v12 = vpop.f32.mrf.mxu1 }
 0x408   :  { %v926_v16 = vadd.f32 %v883_v8, %v869_v3  ;;  %v927_v17 = vadd.f32 %v896_v12, %v870_v7 }
 0x40a   :  { %v1407_v21 = vmul.f32 -1.442695, %v926_v16  ;;  %v1408_v28 = vmul.f32 -1.442695, %v927_v17 }
 0x40c   :  { %1536 = vpow2.f32 %v1407_v21  ;;  %v997_v21 = vld [vmem:[#allocation4 + $0xd8] sm:$0xff] }
 0x40d   :  { %1538 = vpow2.f32 %v1408_v28 }
 0x40e   :  { %v909_v33 = vpop.f32.mrf.mxu2  ;;  %v922_v34 = vpop.f32.mrf.mxu3 }
 0x40f   :  { %v929_v41 = vadd.f32 %v922_v34, %v872_v32  ;;  %v885_v42 = vpop.f32.mrf.mxu0  ;;  %v898_v45 = vpop.f32.mrf.mxu1  ;;  %v928_v24 = vadd.f32 %v909_v33, %v871_v6 }
 0x411   :  { %v1409_v46 = vmul.f32 -1.442695, %v929_v41 }
 0x412   :  { %v1537_v53 = vpop.eup %1536 }
 0x413   :  { %v1539_v54 = vpop.eup %1538  ;;  %v933_v57 = vadd.f32 1.0, %v1537_v53  ;;  %1540 = vpow2.f32 %v1409_v46 }
 0x414   :  { %v952_v58 = vadd.f32 1.0, %v1539_v54 }
 0x415   :  { %1542 = vrcp.f32 %v933_v57  ;;  %v945_v44 = vand.u32 2147483648, %v933_v57  ;;  %v943_v35 = vand.u32 2147483647, %v933_v57  ;;  %vm939_vm14 = vweird.f32 %v933_v57 }
 0x416   :  { %1544 = vrcp.f32 %v952_v58  ;;  %v911_v1 = vpop.f32.mrf.mxu2  ;;  %v924_v2 = vpop.f32.mrf.mxu3  ;;  %v964_v4 = vand.u32 2147483648, %v952_v58  ;;  %v962_v14 = vand.u32 2147483647, %v952_v58  ;;  %vm958_vm15 = vweird.f32 %v952_v58 }
 0x417   :  { %v946_v49 = vor.u32 1.1754944e-38, %v945_v44  ;;  %vm944_vm2 = vcmp.eq.f32.partialorder %v943_v35, 8.507059e+37  ;;  %v996_v1 = vld [vmem:[#allocation4 + $0xd0] sm:$0xff] }
 0x418   :  { %v965_v52 = vor.u32 1.1754944e-38, %v964_v4  ;;  %vm963_vm3 = vcmp.eq.f32.partialorder %v962_v14, 8.507059e+37 }
 0x419   :  { %v1541_v9 = vpop.eup %1540 }
 0x41a   :  { %v972_v19 = vadd.f32 1.0, %v1541_v9 }
 0x41b   :  { %v1543_v20 = vpop.eup %1542 }
 0x41c   :  { %v1545_v25 = vpop.eup %1544  ;;  %v935_v36 = vmul.f32 %v1543_v20, %v933_v57  ;;  %1546 = vrcp.f32 %v972_v19  ;;  %vm940_vm12 = vweird.f32 %v1543_v20  ;;  %v984_v22 = vand.u32 2147483648, %v972_v19 }
 0x41d   :  { %v954_v37 = vmul.f32 %v1545_v25, %v952_v58  ;;  %1548 = vtanh.f32 %v928_v24  ;;  %vm959_vm13 = vweird.f32 %v1545_v25  ;;  %vm941_vm0 = vmor %vm939_vm14, %vm940_vm12  ;;  %vm978_vm5 = vweird.f32 %v972_v19 }
 0x41e   :  { %v936_v38 = vsub.f32 1.0, %v935_v36  ;;  %vm960_vm1 = vmor %vm958_vm15, %vm959_vm13  ;;  %v982_v30 = vand.u32 2147483647, %v972_v19  ;;  %v985_v40 = vor.u32 1.1754944e-38, %v984_v22 }
 0x41f   :  { %v955_v39 = vsub.f32 1.0, %v954_v37 }
 0x420   :  { %v937_v31 = vmul.f32 %v1543_v20, %v936_v38  ;;  %vm983_vm7 = vcmp.eq.f32.partialorder %v982_v30, 8.507059e+37 }
 0x421   :  { %v956_v29 = vmul.f32 %v1545_v25, %v955_v39 }
 0x422   :  { %v1547_v47 = vpop.eup %1546  ;;  %v938_v48 = vadd.f32 %v1543_v20, %v937_v31 }
 0x423   :  { %v957_v50 = vadd.f32 %v1545_v25, %v956_v29  ;;  %v974_v51 = vmul.f32 %v1547_v47, %v972_v19  ;;  %v1549_v56 = vpop.eup %1548  ;;  %vm979_vm4 = vweird.f32 %v1547_v47 }
 0x424   :  { %v942_v55 = vsel %vm941_vm0, %v1543_v20, %v938_v48  ;;  %vm980_vm6 = vmor %vm978_vm5, %vm979_vm4 }
 0x425   :  { %v947_v59 = vsel %vm944_vm2, %v946_v49, %v942_v55  ;;  %v961_v60 = vsel %vm960_vm1, %v1545_v25, %v957_v50  ;;  %v975_v61 = vsub.f32 1.0, %v974_v51 }
 0x426   :  { %v966_v62 = vsel %vm963_vm3, %v965_v52, %v961_v60  ;;  %v989_v63 = vmul.f32 %v1549_v56, %v947_v59 }
 0x427   :  { %v988_v13 = vmul.f32 %v966_v62, %v1995_v0  ;;  %v976_v11 = vmul.f32 %v1547_v47, %v975_v61  ;;  %v994_v0 = vld [vmem:[#allocation4 + $0xc0] sm:$0xff] }
 0x429   :  { %v2031_v15 = vadd.f32 %v989_v63, %v988_v13  ;;  %v977_v18 = vadd.f32 %v1547_v47, %v976_v11 }
 0x42b   :  { %1550 = vtanh.f32 %v2031_v15  ;;  %v981_v27 = vsel %vm980_vm6, %v1547_v47, %v977_v18 }
 0x42c   :  { %v986_v43 = vsel %vm983_vm7, %v985_v40, %v981_v27 }
 0x431   :  { %v1551_v26 = vpop.eup %1550 }
 0x432   :  { %v992_v23 = vmul.f32 %v1551_v26, %v986_v43 }
 0x434   :  { %v998_v10 = vpack.c.bf16 %v992_v23, %v992_v23 }
 0x436   :  { %1007 = vmatmul.bf16.vlgmr.msra.gmra.mxu0 %v998_v10  ;;  %1020 = vmatmul.bf16.vlgmr.msra.gmra.mxu1 %v998_v10 }
 0x437   :  { %1033 = vmatmul.bf16.vlgmr.msra.gmra.mxu2 %v998_v10  ;;  %1046 = vmatmul.bf16.vlgmr.msra.gmra.mxu3 %v998_v10  ;;  %v1120_v10 = vld [vmem:[#allocation4 + $0xe8] sm:$0xff] }
 0x4b3   :  { %v1008_v3 = vpop.f32.mrf.mxu0  ;;  %v1021_v7 = vpop.f32.mrf.mxu1 }
 0x4b4   :  { %v1051_v8 = vadd.f32 %v1008_v3, %v994_v0  ;;  %v1052_v12 = vadd.f32 %v1021_v7, %v995_v5 }
 0x4b6   :  { %v1410_v16 = vmul.f32 -1.442695, %v1051_v8  ;;  %v1411_v17 = vmul.f32 -1.442695, %v1052_v12 }
 0x4b8   :  { %1552 = vpow2.f32 %v1410_v16  ;;  %v1122_v16 = vld [vmem:[#allocation4 + $0xf8] sm:$0xff] }
 0x4b9   :  { %1554 = vpow2.f32 %v1411_v17 }
 0x4ba   :  { %v1034_v28 = vpop.f32.mrf.mxu2  ;;  %v1047_v32 = vpop.f32.mrf.mxu3 }
 0x4bb   :  { %v1054_v33 = vadd.f32 %v1047_v32, %v997_v21  ;;  %v1010_v34 = vpop.f32.mrf.mxu0  ;;  %v1023_v41 = vpop.f32.mrf.mxu1  ;;  %v1053_v19 = vadd.f32 %v1034_v28, %v996_v1 }
 0x4bd   :  { %v1412_v42 = vmul.f32 -1.442695, %v1054_v33 }
 0x4be   :  { %v1553_v45 = vpop.eup %1552 }
 0x4bf   :  { %v1555_v46 = vpop.eup %1554  ;;  %v1058_v53 = vadd.f32 1.0, %v1553_v45  ;;  %1556 = vpow2.f32 %v1412_v42 }
 0x4c0   :  { %v1077_v54 = vadd.f32 1.0, %v1555_v46 }
 0x4c1   :  { %1558 = vrcp.f32 %v1058_v53  ;;  %v1070_v38 = vand.u32 2147483648, %v1058_v53  ;;  %v1068_v4 = vand.u32 2147483647, %v1058_v53  ;;  %vm1064_vm10 = vweird.f32 %v1058_v53 }
 0x4c2   :  { %1560 = vrcp.f32 %v1077_v54  ;;  %v1036_v57 = vpop.f32.mrf.mxu2  ;;  %v1049_v58 = vpop.f32.mrf.mxu3  ;;  %v1089_v39 = vand.u32 2147483648, %v1077_v54  ;;  %v1087_v35 = vand.u32 2147483647, %v1077_v54  ;;  %vm1083_vm11 = vweird.f32 %v1077_v54 }
 0x4c3   :  { %v1071_v47 = vor.u32 1.1754944e-38, %v1070_v38  ;;  %vm1069_vm14 = vcmp.eq.f32.partialorder %v1068_v4, 8.507059e+37  ;;  %v1121_v57 = vld [vmem:[#allocation4 + $0xf0] sm:$0xff] }
 0x4c4   :  { %v1090_v50 = vor.u32 1.1754944e-38, %v1089_v39  ;;  %vm1088_vm15 = vcmp.eq.f32.partialorder %v1087_v35, 8.507059e+37 }
 0x4c5   :  { %v1557_v2 = vpop.eup %1556 }
 0x4c6   :  { %v1097_v6 = vadd.f32 1.0, %v1557_v2 }
 0x4c7   :  { %v1559_v9 = vpop.eup %1558 }
 0x4c8   :  { %v1561_v20 = vpop.eup %1560  ;;  %v1060_v24 = vmul.f32 %v1559_v9, %v1058_v53  ;;  %1562 = vrcp.f32 %v1097_v6  ;;  %vm1065_vm8 = vweird.f32 %v1559_v9  ;;  %v1109_v18 = vand.u32 2147483648, %v1097_v6 }
 0x4c9   :  { %v1079_v25 = vmul.f32 %v1561_v20, %v1077_v54  ;;  %1564 = vtanh.f32 %v1053_v19  ;;  %vm1084_vm9 = vweird.f32 %v1561_v20  ;;  %vm1066_vm12 = vmor %vm1064_vm10, %vm1065_vm8  ;;  %vm1103_vm1 = vweird.f32 %v1097_v6 }
 0x4ca   :  { %v1061_v36 = vsub.f32 1.0, %v1060_v24  ;;  %vm1085_vm13 = vmor %vm1083_vm11, %vm1084_vm9  ;;  %v1107_v22 = vand.u32 2147483647, %v1097_v6  ;;  %v1110_v27 = vor.u32 1.1754944e-38, %v1109_v18 }
 0x4cb   :  { %v1080_v37 = vsub.f32 1.0, %v1079_v25 }
 0x4cc   :  { %v1062_v44 = vmul.f32 %v1559_v9, %v1061_v36  ;;  %vm1108_vm3 = vcmp.eq.f32.partialorder %v1107_v22, 8.507059e+37 }
 0x4cd   :  { %v1081_v31 = vmul.f32 %v1561_v20, %v1080_v37 }
 0x4ce   :  { %v1563_v29 = vpop.eup %1562  ;;  %v1063_v14 = vadd.f32 %v1559_v9, %v1062_v44 }
 0x4cf   :  { %v1082_v48 = vadd.f32 %v1561_v20, %v1081_v31  ;;  %v1099_v49 = vmul.f32 %v1563_v29, %v1097_v6  ;;  %v1565_v52 = vpop.eup %1564  ;;  %vm1104_vm0 = vweird.f32 %v1563_v29 }
 0x4d0   :  { %v1067_v51 = vsel %vm1066_vm12, %v1559_v9, %v1063_v14  ;;  %vm1105_vm2 = vmor %vm1103_vm1, %vm1104_vm0 }
 0x4d1   :  { %v1072_v55 = vsel %vm1069_vm14, %v1071_v47, %v1067_v51  ;;  %v1086_v56 = vsel %vm1085_vm13, %v1561_v20, %v1082_v48  ;;  %v1100_v59 = vsub.f32 1.0, %v1099_v49 }
 0x4d2   :  { %v1091_v60 = vsel %vm1088_vm15, %v1090_v50, %v1086_v56  ;;  %v1114_v61 = vmul.f32 %v1565_v52, %v1072_v55 }
 0x4d3   :  { %v1113_v62 = vmul.f32 %v1091_v60, %v2031_v15  ;;  %v1101_v63 = vmul.f32 %v1563_v29, %v1100_v59  ;;  %v1119_v15 = vld [vmem:[#allocation4 + $0xe0] sm:$0xff] }
 0x4d5   :  { %v2035_v13 = vadd.f32 %v1114_v61, %v1113_v62  ;;  %v1102_v11 = vadd.f32 %v1563_v29, %v1101_v63 }
 0x4d7   :  { %1566 = vtanh.f32 %v2035_v13  ;;  %v1106_v30 = vsel %vm1105_vm2, %v1563_v29, %v1102_v11 }
 0x4d8   :  { %v1111_v26 = vsel %vm1108_vm3, %v1110_v27, %v1106_v30 }
 0x4dd   :  { %v1567_v40 = vpop.eup %1566 }
 0x4de   :  { %v1117_v43 = vmul.f32 %v1567_v40, %v1111_v26 }
 0x4e0   :  { %v1123_v23 = vpack.c.bf16 %v1117_v43, %v1117_v43 }
 0x4e2   :  { %1132 = vmatmul.bf16.vlgmr.msrb.gmra.mxu0 %v1123_v23  ;;  %1145 = vmatmul.bf16.vlgmr.msrb.gmra.mxu1 %v1123_v23 }
 0x4e3   :  { %1158 = vmatmul.bf16.vlgmr.msrb.gmra.mxu2 %v1123_v23  ;;  %1171 = vmatmul.bf16.vlgmr.msrb.gmra.mxu3 %v1123_v23 }
 0x55f   :  { %v1133_v0 = vpop.f32.mrf.mxu0  ;;  %v1146_v5 = vpop.f32.mrf.mxu1 }
 0x560   :  { %v1176_v3 = vadd.f32 %v1133_v0, %v1119_v15  ;;  %v1177_v7 = vadd.f32 %v1146_v5, %v1120_v10 }
 0x562   :  { %v1413_v8 = vmul.f32 -1.442695, %v1176_v3  ;;  %v1414_v12 = vmul.f32 -1.442695, %v1177_v7 }
 0x564   :  { %1568 = vpow2.f32 %v1413_v8 }
 0x565   :  { %1570 = vpow2.f32 %v1414_v12 }
 0x566   :  { %v1159_v17 = vpop.f32.mrf.mxu2  ;;  %v1172_v21 = vpop.f32.mrf.mxu3 }
 0x567   :  { %v1179_v28 = vadd.f32 %v1172_v21, %v1122_v16  ;;  %v1135_v32 = vpop.f32.mrf.mxu0  ;;  %v1148_v33 = vpop.f32.mrf.mxu1  ;;  %v1178_v6 = vadd.f32 %v1159_v17, %v1121_v57 }
 0x569   :  { %v1415_v34 = vmul.f32 -1.442695, %v1179_v28 }
 0x56a   :  { %v1569_v41 = vpop.eup %1568 }
 0x56b   :  { %v1571_v42 = vpop.eup %1570  ;;  %v1183_v45 = vadd.f32 1.0, %v1569_v41  ;;  %1572 = vpow2.f32 %v1415_v34 }
 0x56c   :  { %v1202_v46 = vadd.f32 1.0, %v1571_v42 }
 0x56d   :  { %1574 = vrcp.f32 %v1183_v45  ;;  %v1195_v36 = vand.u32 2147483648, %v1183_v45  ;;  %v1193_v39 = vand.u32 2147483647, %v1183_v45  ;;  %vm1189_vm6 = vweird.f32 %v1183_v45 }
 0x56e   :  { %1576 = vrcp.f32 %v1202_v46  ;;  %v1161_v53 = vpop.f32.mrf.mxu2  ;;  %v1174_v54 = vpop.f32.mrf.mxu3  ;;  %v1214_v37 = vand.u32 2147483648, %v1202_v46  ;;  %v1212_v4 = vand.u32 2147483647, %v1202_v46  ;;  %vm1208_vm7 = vweird.f32 %v1202_v46 }
 0x56f   :  { %v1196_v29 = vor.u32 1.1754944e-38, %v1195_v36  ;;  %vm1194_vm10 = vcmp.eq.f32.partialorder %v1193_v39, 8.507059e+37 }
 0x570   :  { %v1215_v48 = vor.u32 1.1754944e-38, %v1214_v37  ;;  %vm1213_vm11 = vcmp.eq.f32.partialorder %v1212_v4, 8.507059e+37 }
 0x571   :  { %v1573_v58 = vpop.eup %1572 }
 0x572   :  { %v1222_v1 = vadd.f32 1.0, %v1573_v58 }
 0x573   :  { %v1575_v2 = vpop.eup %1574 }
 0x574   :  { %v1577_v9 = vpop.eup %1576  ;;  %v1185_v19 = vmul.f32 %v1575_v2, %v1183_v45  ;;  %1578 = vrcp.f32 %v1222_v1  ;;  %vm1190_vm4 = vweird.f32 %v1575_v2  ;;  %v1234_v11 = vand.u32 2147483648, %v1222_v1 }
 0x575   :  { %v1204_v20 = vmul.f32 %v1577_v9, %v1202_v46  ;;  %1580 = vtanh.f32 %v1178_v6  ;;  %vm1209_vm5 = vweird.f32 %v1577_v9  ;;  %vm1191_vm8 = vmor %vm1189_vm6, %vm1190_vm4  ;;  %vm1228_vm13 = vweird.f32 %v1222_v1 }
 0x576   :  { %v1186_v24 = vsub.f32 1.0, %v1185_v19  ;;  %vm1210_vm9 = vmor %vm1208_vm7, %vm1209_vm5  ;;  %v1232_v18 = vand.u32 2147483647, %v1222_v1  ;;  %v1235_v30 = vor.u32 1.1754944e-38, %v1234_v11 }
 0x577   :  { %v1205_v25 = vsub.f32 1.0, %v1204_v20 }
 0x578   :  { %v1187_v38 = vmul.f32 %v1575_v2, %v1186_v24  ;;  %vm1233_vm15 = vcmp.eq.f32.partialorder %v1232_v18, 8.507059e+37 }
 0x579   :  { %v1206_v44 = vmul.f32 %v1577_v9, %v1205_v25 }
 0x57a   :  { %v1579_v31 = vpop.eup %1578  ;;  %v1188_v35 = vadd.f32 %v1575_v2, %v1187_v38 }
 0x57b   :  { %v1207_v14 = vadd.f32 %v1577_v9, %v1206_v44  ;;  %v1224_v47 = vmul.f32 %v1579_v31, %v1222_v1  ;;  %v1581_v50 = vpop.eup %1580  ;;  %vm1229_vm12 = vweird.f32 %v1579_v31 }
 0x57c   :  { %v1192_v49 = vsel %vm1191_vm8, %v1575_v2, %v1188_v35  ;;  %vm1230_vm14 = vmor %vm1228_vm13, %vm1229_vm12 }
 0x57d   :  { %v1197_v51 = vsel %vm1194_vm10, %v1196_v29, %v1192_v49  ;;  %v1211_v52 = vsel %vm1210_vm9, %v1577_v9, %v1207_v14  ;;  %v1225_v55 = vsub.f32 1.0, %v1224_v47 }
 0x57e   :  { %v1216_v56 = vsel %vm1213_vm11, %v1215_v48, %v1211_v52  ;;  %v1239_v59 = vmul.f32 %v1581_v50, %v1197_v51 }
 0x57f   :  { %v1238_v60 = vmul.f32 %v1216_v56, %v2035_v13  ;;  %v1226_v61 = vmul.f32 %v1579_v31, %v1225_v55 }
 0x581   :  { %v1240_v62 = vadd.f32 %v1239_v59, %v1238_v60  ;;  %v1227_v63 = vadd.f32 %v1579_v31, %v1226_v61 }
 0x583   :  { %1582 = vtanh.f32 %v1240_v62  ;;  %v1231_v22 = vsel %vm1230_vm14, %v1579_v31, %v1227_v63 }
 0x584   :  { %v1236_v13 = vsel %vm1233_vm15, %v1235_v30, %v1231_v22 }
 0x589   :  { %v1583_v27 = vpop.eup %1582 }
 0x58a   :  { %v1242_v40 = vmul.f32 %v1583_v27, %v1236_v13 }
 0x58c   :  { %1245 = vst [vmem:[#allocation9] sm:$0xff] %v1242_v40 }
 0x58d   :  { %1256 = dma.vmem_to_hbm [thread:$0]  %s1252_s1, 128, %s1254_s25, [#allocation6]  }
 0x58e   :  { %1660 = dma.done.wait [#allocation6], 128  }
 0x58f   :  { %1661 = vsyncadd [#allocation6], 4294967168 }
 0x590   :  { %1261 = vsyncpa [#allocation5], 1 }
 0x591   :  { %1262 = vsyncpa [#allocation8], 1 }
 0x592   :  { %1263 = vsyncpa [#allocation6], 1 }

</bundles_post_ra>
